<compile_context>
chip_gen: v7x
topology: tpu7x:2x2x1
jax: 0.10.0
libtpu: 0.0.40
codegen_flags: <defaults>
</compile_context>

<pallas_src>
import functools

import jax
import jax.numpy as jnp
from jax.experimental import pallas as pl
from jax.experimental.pallas import tpu as pltpu  # noqa: F401  (TPU backend)


# ----------------------------- config ---------------------------------------
VOCAB_SIZE = 64
BLOCK_SIZE = 16       # max sequence length (positional table size)
EMB_DIM    = 32
N_HEADS    = 4
N_BLOCKS   = 2
LN_EPS     = 1e-5


# ----------------------- fused encoder-stack kernel -------------------------
def encoder_stack_kernel(x_ref,        # (B*T, C) f32 embeddings
                         valid_ref,    # (B*T, B*T) f32 0/1 attention validity
                         wf_ref,       # (L, C, 7C) fused [W1|Wq|Wk|Wv] (LN/scale folded)
                         bf_ref,       # (L, 1, 7C) fused bias
                         w2_ref,       # (L, 4C, C) FF second layer
                         b2_ref,       # (L, 1, C)
                         o_ref,        # (B*T, C) output
                         *, n_heads, n_layers):
    x = x_ref[...]                                   # running activation (value)
    BT, C = x.shape
    hd = C // n_heads

    # layer-invariant: bool mask + per-head 0/1 lane masks, computed ONCE
    valid = valid_ref[...] != 0.0                    # (BT, BT) bool
    lane = jax.lax.broadcasted_iota(jnp.int32, (1, C), 1)
    head_masks = [((lane >= h * hd) & (lane < (h + 1) * hd)).astype(jnp.float32)
                  for h in range(n_heads)]

    for l in range(n_layers):                        # unrolled (static indices)
        wf = wf_ref[l]                               # (C, 7C)
        bf = bf_ref[l]                               # (1, 7C)
        w2 = w2_ref[l]                               # (4C, C)
        b2 = b2_ref[l]                               # (1, C)

        # LayerNorm stats are shared: ln1 AND ln2 act on the block input.
        mu = jnp.mean(x, axis=-1, keepdims=True)
        var = jnp.mean((x - mu) ** 2, axis=-1, keepdims=True)
        xhat = (x - mu) * jax.lax.rsqrt(var + LN_EPS)

        # One wide projection: [pre-relu h1 | q*sqrt(C) | k | v]  (LN folded).
        proj = jnp.dot(xhat, wf, preferred_element_type=jnp.float32) + bf

        h1 = jnp.maximum(proj[:, 0:4 * C], 0.0)      # (BT, 4C) relu(FF1(ln2(x)))
        q = proj[:, 4 * C:5 * C]                     # (BT, C), already * sqrt(C)
        k = proj[:, 5 * C:6 * C]
        v = proj[:, 6 * C:7 * C]

        # Per-head attention via lane masks: no hd-wide slices, no concat.
        kT = k.T                                     # shared across heads
        y = jnp.zeros((BT, C), jnp.float32)
        for h in range(n_heads):
            mh = head_masks[h]                       # (1, C) 0/1
            s = jnp.dot(q * mh, kT, preferred_element_type=jnp.float32)  # (BT, BT)
            s = jnp.where(valid, s, jnp.float32(-1e9))
            s = s - jnp.max(s, axis=-1, keepdims=True)
            p = jnp.exp(s)
            p = p * pl.reciprocal(jnp.sum(p, axis=-1, keepdims=True), approx=True)
            # head-h output lands directly in its own lanes of y
            y = y + jnp.dot(p, v * mh, preferred_element_type=jnp.float32)

        ff = jnp.dot(h1, w2, preferred_element_type=jnp.float32) + b2
        x = x + y + ff                               # both residuals off block input

    o_ref[...] = x.astype(o_ref.dtype)


def encoder_stack_call(x_flat, valid, folded, *, n_heads):
    """x_flat: (B*T, C) f32, valid: (B*T, B*T) f32, folded: fused weight stacks."""
    BT, C = x_flat.shape
    L = folded["w_fused"].shape[0]
    kernel = functools.partial(encoder_stack_kernel, n_heads=n_heads, n_layers=L)
    # grid=() : single kernel invocation, all operands fully resident in VMEM
    # (~95 KB total) — no pipeline steps, no scratch, no per-layer DMA.
    return pl.pallas_call(
        kernel,
        out_shape=jax.ShapeDtypeStruct((BT, C), jnp.float32),
    )(x_flat, valid, folded["w_fused"], folded["b_fused"],
      folded["w2"], folded["b2"])


# -------------------- host-side parameter folding ---------------------------
def fold_block_params(blocks):
    """Fold LN affine + logit scale into weights; fuse QKV and FF1 into (C, 7C)."""
    C = blocks["w_qkv"].shape[1]
    g1 = jnp.swapaxes(blocks["ln1_g"], 1, 2)         # (L, C, 1)
    g2 = jnp.swapaxes(blocks["ln2_g"], 1, 2)
    beta1 = blocks["ln1_b"]                          # (L, 1, C)
    beta2 = blocks["ln2_b"]

    # ln(x) @ W + b == xhat @ (diag(g) @ W) + (beta @ W + b)
    wqkv_f = blocks["w_qkv"] * g1                                        # (L, C, 3C)
    bqkv_f = blocks["b_qkv"] + jnp.einsum('loc,lcd->lod', beta1, blocks["w_qkv"])
    w1_f = blocks["w1"] * g2                                             # (L, C, 4C)
    b1_f = blocks["b1"] + jnp.einsum('loc,lcd->lod', beta2, blocks["w1"])

    # Reference quirk: att = q @ k^T / emb_dim**(-0.5)  ==  (q*sqrt(C)) @ k^T.
    sq = jnp.sqrt(jnp.float32(C))
    col_scale = jnp.concatenate(
        [jnp.full((C,), sq, jnp.float32), jnp.ones((2 * C,), jnp.float32)])
    wqkv_f = wqkv_f * col_scale
    bqkv_f = bqkv_f * col_scale

    # Column order [h1(4C) | q | k | v] so the 4C slice is 128-lane aligned.
    return {
        "w_fused": jnp.concatenate([w1_f, wqkv_f], axis=2),   # (L, C, 7C)
        "b_fused": jnp.concatenate([b1_f, bqkv_f], axis=2),   # (L, 1, 7C)
        "w2": blocks["w2"],                                    # (L, 4C, C)
        "b2": blocks["b2"],                                    # (L, 1, C)
    }


# ------------------------------ full encoder ---------------------------------
def init_params(key):
    """Deterministic synthetic parameters; per-layer tensors stacked on axis 0."""
    ks = jax.random.split(key, 2 + N_BLOCKS)
    wq, w1, w2, bq = [], [], [], []
    for i in range(N_BLOCKS):
        kq, k1, k2, kb = jax.random.split(ks[2 + i], 4)
        wq.append(0.02 * jax.random.normal(kq, (EMB_DIM, 3 * EMB_DIM), jnp.float32))
        bq.append(0.01 * jax.random.normal(kb, (1, 3 * EMB_DIM), jnp.float32))
        w1.append(0.02 * jax.random.normal(k1, (EMB_DIM, 4 * EMB_DIM), jnp.float32))
        w2.append(0.02 * jax.random.normal(k2, (4 * EMB_DIM, EMB_DIM), jnp.float32))
    blocks = {
        "ln1_g": jnp.ones((N_BLOCKS, 1, EMB_DIM), jnp.float32),
        "ln1_b": jnp.zeros((N_BLOCKS, 1, EMB_DIM), jnp.float32),
        "w_qkv": jnp.stack(wq),                                  # (L, C, 3C)
        "b_qkv": jnp.stack(bq),                                  # (L, 1, 3C)
        "ln2_g": jnp.ones((N_BLOCKS, 1, EMB_DIM), jnp.float32),
        "ln2_b": jnp.zeros((N_BLOCKS, 1, EMB_DIM), jnp.float32),
        "w1": jnp.stack(w1),                                     # (L, C, 4C)
        "b1": jnp.zeros((N_BLOCKS, 1, 4 * EMB_DIM), jnp.float32),
        "w2": jnp.stack(w2),                                     # (L, 4C, C)
        "b2": jnp.zeros((N_BLOCKS, 1, EMB_DIM), jnp.float32),
    }
    return {
        "tok_emb": 0.02 * jax.random.normal(ks[0], (VOCAB_SIZE, EMB_DIM), jnp.float32),
        "pos_emb": 0.02 * jax.random.normal(ks[1], (BLOCK_SIZE, EMB_DIM), jnp.float32),
        "blocks": blocks,
    }


def encoder_forward(params, folded_blocks, src_tokens, src_mask):
    """src_tokens: (B, T) int32, src_mask: (B, T, T) bool (1 = attend) -> (B, T, C)."""
    B, T = src_tokens.shape
    C = params["tok_emb"].shape[1]
    # InputEmbeddings (gather = glue, kept in plain JAX)
    tok = jnp.take(params["tok_emb"], src_tokens, axis=0)        # (B, T, C)
    pos = params["pos_emb"][:T]                                  # (T, C)
    x = (tok + pos[None, :, :]).astype(jnp.float32).reshape(B * T, C)

    # Batch-block-diagonal validity matrix for the folded (B*T, B*T) attention:
    # valid[b*T+i, c*T+j] = (b == c) and src_mask[b, i, j]
    mask_f = jnp.broadcast_to(src_mask, (B, T, T)).astype(jnp.float32)
    eye_b = jnp.eye(B, dtype=jnp.float32)
    valid = jnp.einsum('bc,bij->bicj', eye_b, mask_f).reshape(B * T, B * T)

    out_flat = encoder_stack_call(x, valid, folded_blocks, n_heads=N_HEADS)
    return out_flat.reshape(B, T, C)


# --------------------------------- main --------------------------------------
if __name__ == "__main__":
    key = jax.random.PRNGKey(0)
    k_par, k_tok = jax.random.split(key)

    params = init_params(k_par)
    folded = fold_block_params(params["blocks"])     # one-time, host-side

    B, T = 2, 8
    src_tokens = jax.random.randint(k_tok, (B, T), 0, VOCAB_SIZE, dtype=jnp.int32)

    # key-padding mask: sequence 0 has 8 valid tokens, sequence 1 has 6
    src_lengths = jnp.array([8, 6], dtype=jnp.int32)
    key_valid = jnp.arange(T)[None, :] < src_lengths[:, None]       # (B, T)
    src_mask = jnp.broadcast_to(key_valid[:, None, :], (B, T, T))   # (B, T, T)

    out = encoder_forward(params, folded, src_tokens, src_mask)
    out = jax.block_until_ready(out)

    assert out.shape == (B, T, EMB_DIM), out.shape
    assert bool(jnp.all(jnp.isfinite(out)))
    print("KERNEL_OK")
</pallas_src>

<mosaic_0001>
module attributes {stable_mosaic.version = 11 : i64} {
  func.func @encoder_stack_kernel(%arg0: memref<16x32xf32, #tpu.memory_space<vmem>>, %arg1: memref<16x16xf32, #tpu.memory_space<vmem>>, %arg2: memref<2x32x224xf32, #tpu.memory_space<vmem>>, %arg3: memref<2x1x224xf32, #tpu.memory_space<vmem>>, %arg4: memref<2x128x32xf32, #tpu.memory_space<vmem>>, %arg5: memref<2x1x32xf32, #tpu.memory_space<vmem>>, %arg6: memref<16x32xf32, #tpu.memory_space<vmem>>) attributes {dimension_semantics = [], scalar_prefetch = 0 : i64, scratch_operands = 0 : i64, tpu.core_type = #tpu.core_type<tc>} {
    %c0 = arith.constant 0 : index
    %c0_0 = arith.constant 0 : index
    %0 = vector.load %arg0[%c0, %c0_0] : memref<16x32xf32, #tpu.memory_space<vmem>>, vector<16x32xf32>
    %c0_1 = arith.constant 0 : index
    %c0_2 = arith.constant 0 : index
    %1 = vector.load %arg1[%c0_1, %c0_2] : memref<16x16xf32, #tpu.memory_space<vmem>>, vector<16x16xf32>
    %cst = arith.constant 0.000000e+00 : f32
    %2 = vector.broadcast %cst : f32 to vector<16x16xf32>
    %3 = arith.cmpf one, %1, %2 : vector<16x16xf32>
    %4 = tpu.iota {dimensions = array<i32: 1>} : vector<1x32xi32>
    %c0_i32 = arith.constant 0 : i32
    %5 = vector.broadcast %c0_i32 : i32 to vector<1x32xi32>
    %6 = arith.cmpi sge, %4, %5 : vector<1x32xi32>
    %c8_i32 = arith.constant 8 : i32
    %7 = vector.broadcast %c8_i32 : i32 to vector<1x32xi32>
    %8 = arith.cmpi slt, %4, %7 : vector<1x32xi32>
    %9 = arith.andi %6, %8 : vector<1x32xi1>
    %10 = arith.extui %9 : vector<1x32xi1> to vector<1x32xi32>
    %11 = arith.sitofp %10 : vector<1x32xi32> to vector<1x32xf32>
    %c8_i32_3 = arith.constant 8 : i32
    %12 = vector.broadcast %c8_i32_3 : i32 to vector<1x32xi32>
    %13 = arith.cmpi sge, %4, %12 : vector<1x32xi32>
    %c16_i32 = arith.constant 16 : i32
    %14 = vector.broadcast %c16_i32 : i32 to vector<1x32xi32>
    %15 = arith.cmpi slt, %4, %14 : vector<1x32xi32>
    %16 = arith.andi %13, %15 : vector<1x32xi1>
    %17 = arith.extui %16 : vector<1x32xi1> to vector<1x32xi32>
    %18 = arith.sitofp %17 : vector<1x32xi32> to vector<1x32xf32>
    %c16_i32_4 = arith.constant 16 : i32
    %19 = vector.broadcast %c16_i32_4 : i32 to vector<1x32xi32>
    %20 = arith.cmpi sge, %4, %19 : vector<1x32xi32>
    %c24_i32 = arith.constant 24 : i32
    %21 = vector.broadcast %c24_i32 : i32 to vector<1x32xi32>
    %22 = arith.cmpi slt, %4, %21 : vector<1x32xi32>
    %23 = arith.andi %20, %22 : vector<1x32xi1>
    %24 = arith.extui %23 : vector<1x32xi1> to vector<1x32xi32>
    %25 = arith.sitofp %24 : vector<1x32xi32> to vector<1x32xf32>
    %c24_i32_5 = arith.constant 24 : i32
    %26 = vector.broadcast %c24_i32_5 : i32 to vector<1x32xi32>
    %27 = arith.cmpi sge, %4, %26 : vector<1x32xi32>
    %c32_i32 = arith.constant 32 : i32
    %28 = vector.broadcast %c32_i32 : i32 to vector<1x32xi32>
    %29 = arith.cmpi slt, %4, %28 : vector<1x32xi32>
    %30 = arith.andi %27, %29 : vector<1x32xi1>
    %31 = arith.extui %30 : vector<1x32xi1> to vector<1x32xi32>
    %32 = arith.sitofp %31 : vector<1x32xi32> to vector<1x32xf32>
    %c0_6 = arith.constant 0 : index
    %c0_7 = arith.constant 0 : index
    %c0_8 = arith.constant 0 : index
    %33 = vector.load %arg2[%c0_6, %c0_7, %c0_8] : memref<2x32x224xf32, #tpu.memory_space<vmem>>, vector<1x32x224xf32>
    %34 = vector.shape_cast %33 : vector<1x32x224xf32> to vector<32x224xf32>
    %c0_9 = arith.constant 0 : index
    %c0_10 = arith.constant 0 : index
    %c0_11 = arith.constant 0 : index
    %35 = vector.load %arg3[%c0_9, %c0_10, %c0_11] : memref<2x1x224xf32, #tpu.memory_space<vmem>>, vector<1x1x224xf32>
    %36 = vector.shape_cast %35 : vector<1x1x224xf32> to vector<1x224xf32>
    %c0_12 = arith.constant 0 : index
    %c0_13 = arith.constant 0 : index
    %c0_14 = arith.constant 0 : index
    %37 = vector.load %arg4[%c0_12, %c0_13, %c0_14] : memref<2x128x32xf32, #tpu.memory_space<vmem>>, vector<1x128x32xf32>
    %38 = vector.shape_cast %37 : vector<1x128x32xf32> to vector<128x32xf32>
    %c0_15 = arith.constant 0 : index
    %c0_16 = arith.constant 0 : index
    %c0_17 = arith.constant 0 : index
    %39 = vector.load %arg5[%c0_15, %c0_16, %c0_17] : memref<2x1x32xf32, #tpu.memory_space<vmem>>, vector<1x1x32xf32>
    %40 = vector.shape_cast %39 : vector<1x1x32xf32> to vector<1x32xf32>
    %cst_18 = arith.constant dense<0.000000e+00> : vector<16xf32>
    %41 = vector.multi_reduction <add>, %0, %cst_18 [1] : vector<16x32xf32> to vector<16xf32>
    %42 = vector.shape_cast %41 : vector<16xf32> to vector<16x1xf32>
    %cst_19 = arith.constant 3.200000e+01 : f32
    %43 = vector.broadcast %cst_19 : f32 to vector<16x1xf32>
    %44 = arith.divf %42, %43 : vector<16x1xf32>
    %45 = vector.broadcast %44 : vector<16x1xf32> to vector<16x32xf32>
    %46 = arith.subf %0, %45 : vector<16x32xf32>
    %47 = arith.mulf %46, %46 : vector<16x32xf32>
    %cst_20 = arith.constant dense<0.000000e+00> : vector<16xf32>
    %48 = vector.multi_reduction <add>, %47, %cst_20 [1] : vector<16x32xf32> to vector<16xf32>
    %49 = vector.shape_cast %48 : vector<16xf32> to vector<16x1xf32>
    %cst_21 = arith.constant 3.200000e+01 : f32
    %50 = vector.broadcast %cst_21 : f32 to vector<16x1xf32>
    %51 = arith.divf %49, %50 : vector<16x1xf32>
    %52 = vector.broadcast %44 : vector<16x1xf32> to vector<16x32xf32>
    %53 = arith.subf %0, %52 : vector<16x32xf32>
    %cst_22 = arith.constant 9.99999974E-6 : f32
    %54 = vector.broadcast %cst_22 : f32 to vector<16x1xf32>
    %55 = arith.addf %51, %54 : vector<16x1xf32>
    %56 = math.rsqrt %55 : vector<16x1xf32>
    %57 = vector.broadcast %56 : vector<16x1xf32> to vector<16x32xf32>
    %58 = arith.mulf %53, %57 : vector<16x32xf32>
    %cst_23 = arith.constant dense<0.000000e+00> : vector<16x224xf32>
    %59 = tpu.matmul %58, %34, %cst_23 {dimension_numbers = #tpu.dot_dimension_numbers<[1], [0], [0], [1], [0, 0, 1, 1], [], []>} : vector<16x32xf32>, vector<32x224xf32>, vector<16x224xf32> -> vector<16x224xf32>
    %60 = vector.broadcast %36 : vector<1x224xf32> to vector<16x224xf32>
    %61 = arith.addf %59, %60 : vector<16x224xf32>
    %62 = vector.extract_strided_slice %61 {offsets = [0, 0], sizes = [16, 128], strides = [1, 1]} : vector<16x224xf32> to vector<16x128xf32>
    %cst_24 = arith.constant 0.000000e+00 : f32
    %63 = vector.broadcast %cst_24 : f32 to vector<16x128xf32>
    %64 = arith.maximumf %62, %63 : vector<16x128xf32>
    %65 = vector.extract_strided_slice %61 {offsets = [0, 128], sizes = [16, 32], strides = [1, 1]} : vector<16x224xf32> to vector<16x32xf32>
    %66 = vector.extract_strided_slice %61 {offsets = [0, 160], sizes = [16, 32], strides = [1, 1]} : vector<16x224xf32> to vector<16x32xf32>
    %67 = vector.extract_strided_slice %61 {offsets = [0, 192], sizes = [16, 32], strides = [1, 1]} : vector<16x224xf32> to vector<16x32xf32>
    %68 = tpu.transpose %66, [1, 0] : vector<16x32xf32> -> vector<32x16xf32>
    %cst_25 = arith.constant 0.000000e+00 : f32
    %69 = vector.broadcast %cst_25 : f32 to vector<16x32xf32>
    %70 = vector.broadcast %11 : vector<1x32xf32> to vector<16x32xf32>
    %71 = arith.mulf %65, %70 : vector<16x32xf32>
    %cst_26 = arith.constant dense<0.000000e+00> : vector<16x16xf32>
    %72 = tpu.matmul %71, %68, %cst_26 {dimension_numbers = #tpu.dot_dimension_numbers<[1], [0], [0], [1], [0, 0, 1, 1], [], []>} : vector<16x32xf32>, vector<32x16xf32>, vector<16x16xf32> -> vector<16x16xf32>
    %cst_27 = arith.constant -1.000000e+09 : f32
    %73 = vector.broadcast %cst_27 : f32 to vector<16x16xf32>
    %74 = arith.select %3, %72, %73 : vector<16x16xi1>, vector<16x16xf32>
    %cst_28 = arith.constant dense<0xFF800000> : vector<16xf32>
    %75 = vector.multi_reduction <maximumf>, %74, %cst_28 [1] : vector<16x16xf32> to vector<16xf32>
    %76 = vector.shape_cast %75 : vector<16xf32> to vector<16x1xf32>
    %77 = vector.broadcast %76 : vector<16x1xf32> to vector<16x16xf32>
    %78 = arith.subf %74, %77 : vector<16x16xf32>
    %79 = math.exp %78 : vector<16x16xf32>
    %cst_29 = arith.constant dense<0.000000e+00> : vector<16xf32>
    %80 = vector.multi_reduction <add>, %79, %cst_29 [1] : vector<16x16xf32> to vector<16xf32>
    %81 = vector.shape_cast %80 : vector<16xf32> to vector<16x1xf32>
    %82 = tpu.reciprocal %81 {approx = true} : vector<16x1xf32> -> vector<16x1xf32>
    %83 = vector.broadcast %82 : vector<16x1xf32> to vector<16x16xf32>
    %84 = arith.mulf %79, %83 : vector<16x16xf32>
    %85 = vector.broadcast %11 : vector<1x32xf32> to vector<16x32xf32>
    %86 = arith.mulf %67, %85 : vector<16x32xf32>
    %cst_30 = arith.constant dense<0.000000e+00> : vector<16x32xf32>
    %87 = tpu.matmul %84, %86, %cst_30 {dimension_numbers = #tpu.dot_dimension_numbers<[1], [0], [0], [1], [0, 0, 1, 1], [], []>} : vector<16x16xf32>, vector<16x32xf32>, vector<16x32xf32> -> vector<16x32xf32>
    %88 = arith.addf %69, %87 : vector<16x32xf32>
    %89 = vector.broadcast %18 : vector<1x32xf32> to vector<16x32xf32>
    %90 = arith.mulf %65, %89 : vector<16x32xf32>
    %cst_31 = arith.constant dense<0.000000e+00> : vector<16x16xf32>
    %91 = tpu.matmul %90, %68, %cst_31 {dimension_numbers = #tpu.dot_dimension_numbers<[1], [0], [0], [1], [0, 0, 1, 1], [], []>} : vector<16x32xf32>, vector<32x16xf32>, vector<16x16xf32> -> vector<16x16xf32>
    %cst_32 = arith.constant -1.000000e+09 : f32
    %92 = vector.broadcast %cst_32 : f32 to vector<16x16xf32>
    %93 = arith.select %3, %91, %92 : vector<16x16xi1>, vector<16x16xf32>
    %cst_33 = arith.constant dense<0xFF800000> : vector<16xf32>
    %94 = vector.multi_reduction <maximumf>, %93, %cst_33 [1] : vector<16x16xf32> to vector<16xf32>
    %95 = vector.shape_cast %94 : vector<16xf32> to vector<16x1xf32>
    %96 = vector.broadcast %95 : vector<16x1xf32> to vector<16x16xf32>
    %97 = arith.subf %93, %96 : vector<16x16xf32>
    %98 = math.exp %97 : vector<16x16xf32>
    %cst_34 = arith.constant dense<0.000000e+00> : vector<16xf32>
    %99 = vector.multi_reduction <add>, %98, %cst_34 [1] : vector<16x16xf32> to vector<16xf32>
    %100 = vector.shape_cast %99 : vector<16xf32> to vector<16x1xf32>
    %101 = tpu.reciprocal %100 {approx = true} : vector<16x1xf32> -> vector<16x1xf32>
    %102 = vector.broadcast %101 : vector<16x1xf32> to vector<16x16xf32>
    %103 = arith.mulf %98, %102 : vector<16x16xf32>
    %104 = vector.broadcast %18 : vector<1x32xf32> to vector<16x32xf32>
    %105 = arith.mulf %67, %104 : vector<16x32xf32>
    %cst_35 = arith.constant dense<0.000000e+00> : vector<16x32xf32>
    %106 = tpu.matmul %103, %105, %cst_35 {dimension_numbers = #tpu.dot_dimension_numbers<[1], [0], [0], [1], [0, 0, 1, 1], [], []>} : vector<16x16xf32>, vector<16x32xf32>, vector<16x32xf32> -> vector<16x32xf32>
    %107 = arith.addf %88, %106 : vector<16x32xf32>
    %108 = vector.broadcast %25 : vector<1x32xf32> to vector<16x32xf32>
    %109 = arith.mulf %65, %108 : vector<16x32xf32>
    %cst_36 = arith.constant dense<0.000000e+00> : vector<16x16xf32>
    %110 = tpu.matmul %109, %68, %cst_36 {dimension_numbers = #tpu.dot_dimension_numbers<[1], [0], [0], [1], [0, 0, 1, 1], [], []>} : vector<16x32xf32>, vector<32x16xf32>, vector<16x16xf32> -> vector<16x16xf32>
    %cst_37 = arith.constant -1.000000e+09 : f32
    %111 = vector.broadcast %cst_37 : f32 to vector<16x16xf32>
    %112 = arith.select %3, %110, %111 : vector<16x16xi1>, vector<16x16xf32>
    %cst_38 = arith.constant dense<0xFF800000> : vector<16xf32>
    %113 = vector.multi_reduction <maximumf>, %112, %cst_38 [1] : vector<16x16xf32> to vector<16xf32>
    %114 = vector.shape_cast %113 : vector<16xf32> to vector<16x1xf32>
    %115 = vector.broadcast %114 : vector<16x1xf32> to vector<16x16xf32>
    %116 = arith.subf %112, %115 : vector<16x16xf32>
    %117 = math.exp %116 : vector<16x16xf32>
    %cst_39 = arith.constant dense<0.000000e+00> : vector<16xf32>
    %118 = vector.multi_reduction <add>, %117, %cst_39 [1] : vector<16x16xf32> to vector<16xf32>
    %119 = vector.shape_cast %118 : vector<16xf32> to vector<16x1xf32>
    %120 = tpu.reciprocal %119 {approx = true} : vector<16x1xf32> -> vector<16x1xf32>
    %121 = vector.broadcast %120 : vector<16x1xf32> to vector<16x16xf32>
    %122 = arith.mulf %117, %121 : vector<16x16xf32>
    %123 = vector.broadcast %25 : vector<1x32xf32> to vector<16x32xf32>
    %124 = arith.mulf %67, %123 : vector<16x32xf32>
    %cst_40 = arith.constant dense<0.000000e+00> : vector<16x32xf32>
    %125 = tpu.matmul %122, %124, %cst_40 {dimension_numbers = #tpu.dot_dimension_numbers<[1], [0], [0], [1], [0, 0, 1, 1], [], []>} : vector<16x16xf32>, vector<16x32xf32>, vector<16x32xf32> -> vector<16x32xf32>
    %126 = arith.addf %107, %125 : vector<16x32xf32>
    %127 = vector.broadcast %32 : vector<1x32xf32> to vector<16x32xf32>
    %128 = arith.mulf %65, %127 : vector<16x32xf32>
    %cst_41 = arith.constant dense<0.000000e+00> : vector<16x16xf32>
    %129 = tpu.matmul %128, %68, %cst_41 {dimension_numbers = #tpu.dot_dimension_numbers<[1], [0], [0], [1], [0, 0, 1, 1], [], []>} : vector<16x32xf32>, vector<32x16xf32>, vector<16x16xf32> -> vector<16x16xf32>
    %cst_42 = arith.constant -1.000000e+09 : f32
    %130 = vector.broadcast %cst_42 : f32 to vector<16x16xf32>
    %131 = arith.select %3, %129, %130 : vector<16x16xi1>, vector<16x16xf32>
    %cst_43 = arith.constant dense<0xFF800000> : vector<16xf32>
    %132 = vector.multi_reduction <maximumf>, %131, %cst_43 [1] : vector<16x16xf32> to vector<16xf32>
    %133 = vector.shape_cast %132 : vector<16xf32> to vector<16x1xf32>
    %134 = vector.broadcast %133 : vector<16x1xf32> to vector<16x16xf32>
    %135 = arith.subf %131, %134 : vector<16x16xf32>
    %136 = math.exp %135 : vector<16x16xf32>
    %cst_44 = arith.constant dense<0.000000e+00> : vector<16xf32>
    %137 = vector.multi_reduction <add>, %136, %cst_44 [1] : vector<16x16xf32> to vector<16xf32>
    %138 = vector.shape_cast %137 : vector<16xf32> to vector<16x1xf32>
    %139 = tpu.reciprocal %138 {approx = true} : vector<16x1xf32> -> vector<16x1xf32>
    %140 = vector.broadcast %139 : vector<16x1xf32> to vector<16x16xf32>
    %141 = arith.mulf %136, %140 : vector<16x16xf32>
    %142 = vector.broadcast %32 : vector<1x32xf32> to vector<16x32xf32>
    %143 = arith.mulf %67, %142 : vector<16x32xf32>
    %cst_45 = arith.constant dense<0.000000e+00> : vector<16x32xf32>
    %144 = tpu.matmul %141, %143, %cst_45 {dimension_numbers = #tpu.dot_dimension_numbers<[1], [0], [0], [1], [0, 0, 1, 1], [], []>} : vector<16x16xf32>, vector<16x32xf32>, vector<16x32xf32> -> vector<16x32xf32>
    %145 = arith.addf %126, %144 : vector<16x32xf32>
    %cst_46 = arith.constant dense<0.000000e+00> : vector<16x32xf32>
    %146 = tpu.matmul %64, %38, %cst_46 {dimension_numbers = #tpu.dot_dimension_numbers<[1], [0], [0], [1], [0, 0, 1, 1], [], []>} : vector<16x128xf32>, vector<128x32xf32>, vector<16x32xf32> -> vector<16x32xf32>
    %147 = vector.broadcast %40 : vector<1x32xf32> to vector<16x32xf32>
    %148 = arith.addf %146, %147 : vector<16x32xf32>
    %149 = arith.addf %0, %145 : vector<16x32xf32>
    %150 = arith.addf %149, %148 : vector<16x32xf32>
    %c1 = arith.constant 1 : index
    %c0_47 = arith.constant 0 : index
    %c0_48 = arith.constant 0 : index
    %151 = vector.load %arg2[%c1, %c0_47, %c0_48] : memref<2x32x224xf32, #tpu.memory_space<vmem>>, vector<1x32x224xf32>
    %152 = vector.shape_cast %151 : vector<1x32x224xf32> to vector<32x224xf32>
    %c1_49 = arith.constant 1 : index
    %c0_50 = arith.constant 0 : index
    %c0_51 = arith.constant 0 : index
    %153 = vector.load %arg3[%c1_49, %c0_50, %c0_51] : memref<2x1x224xf32, #tpu.memory_space<vmem>>, vector<1x1x224xf32>
    %154 = vector.shape_cast %153 : vector<1x1x224xf32> to vector<1x224xf32>
    %c1_52 = arith.constant 1 : index
    %c0_53 = arith.constant 0 : index
    %c0_54 = arith.constant 0 : index
    %155 = vector.load %arg4[%c1_52, %c0_53, %c0_54] : memref<2x128x32xf32, #tpu.memory_space<vmem>>, vector<1x128x32xf32>
    %156 = vector.shape_cast %155 : vector<1x128x32xf32> to vector<128x32xf32>
    %c1_55 = arith.constant 1 : index
    %c0_56 = arith.constant 0 : index
    %c0_57 = arith.constant 0 : index
    %157 = vector.load %arg5[%c1_55, %c0_56, %c0_57] : memref<2x1x32xf32, #tpu.memory_space<vmem>>, vector<1x1x32xf32>
    %158 = vector.shape_cast %157 : vector<1x1x32xf32> to vector<1x32xf32>
    %cst_58 = arith.constant dense<0.000000e+00> : vector<16xf32>
    %159 = vector.multi_reduction <add>, %150, %cst_58 [1] : vector<16x32xf32> to vector<16xf32>
    %160 = vector.shape_cast %159 : vector<16xf32> to vector<16x1xf32>
    %cst_59 = arith.constant 3.200000e+01 : f32
    %161 = vector.broadcast %cst_59 : f32 to vector<16x1xf32>
    %162 = arith.divf %160, %161 : vector<16x1xf32>
    %163 = vector.broadcast %162 : vector<16x1xf32> to vector<16x32xf32>
    %164 = arith.subf %150, %163 : vector<16x32xf32>
    %165 = arith.mulf %164, %164 : vector<16x32xf32>
    %cst_60 = arith.constant dense<0.000000e+00> : vector<16xf32>
    %166 = vector.multi_reduction <add>, %165, %cst_60 [1] : vector<16x32xf32> to vector<16xf32>
    %167 = vector.shape_cast %166 : vector<16xf32> to vector<16x1xf32>
    %cst_61 = arith.constant 3.200000e+01 : f32
    %168 = vector.broadcast %cst_61 : f32 to vector<16x1xf32>
    %169 = arith.divf %167, %168 : vector<16x1xf32>
    %170 = vector.broadcast %162 : vector<16x1xf32> to vector<16x32xf32>
    %171 = arith.subf %150, %170 : vector<16x32xf32>
    %cst_62 = arith.constant 9.99999974E-6 : f32
    %172 = vector.broadcast %cst_62 : f32 to vector<16x1xf32>
    %173 = arith.addf %169, %172 : vector<16x1xf32>
    %174 = math.rsqrt %173 : vector<16x1xf32>
    %175 = vector.broadcast %174 : vector<16x1xf32> to vector<16x32xf32>
    %176 = arith.mulf %171, %175 : vector<16x32xf32>
    %cst_63 = arith.constant dense<0.000000e+00> : vector<16x224xf32>
    %177 = tpu.matmul %176, %152, %cst_63 {dimension_numbers = #tpu.dot_dimension_numbers<[1], [0], [0], [1], [0, 0, 1, 1], [], []>} : vector<16x32xf32>, vector<32x224xf32>, vector<16x224xf32> -> vector<16x224xf32>
    %178 = vector.broadcast %154 : vector<1x224xf32> to vector<16x224xf32>
    %179 = arith.addf %177, %178 : vector<16x224xf32>
    %180 = vector.extract_strided_slice %179 {offsets = [0, 0], sizes = [16, 128], strides = [1, 1]} : vector<16x224xf32> to vector<16x128xf32>
    %cst_64 = arith.constant 0.000000e+00 : f32
    %181 = vector.broadcast %cst_64 : f32 to vector<16x128xf32>
    %182 = arith.maximumf %180, %181 : vector<16x128xf32>
    %183 = vector.extract_strided_slice %179 {offsets = [0, 128], sizes = [16, 32], strides = [1, 1]} : vector<16x224xf32> to vector<16x32xf32>
    %184 = vector.extract_strided_slice %179 {offsets = [0, 160], sizes = [16, 32], strides = [1, 1]} : vector<16x224xf32> to vector<16x32xf32>
    %185 = vector.extract_strided_slice %179 {offsets = [0, 192], sizes = [16, 32], strides = [1, 1]} : vector<16x224xf32> to vector<16x32xf32>
    %186 = tpu.transpose %184, [1, 0] : vector<16x32xf32> -> vector<32x16xf32>
    %cst_65 = arith.constant 0.000000e+00 : f32
    %187 = vector.broadcast %cst_65 : f32 to vector<16x32xf32>
    %188 = vector.broadcast %11 : vector<1x32xf32> to vector<16x32xf32>
    %189 = arith.mulf %183, %188 : vector<16x32xf32>
    %cst_66 = arith.constant dense<0.000000e+00> : vector<16x16xf32>
    %190 = tpu.matmul %189, %186, %cst_66 {dimension_numbers = #tpu.dot_dimension_numbers<[1], [0], [0], [1], [0, 0, 1, 1], [], []>} : vector<16x32xf32>, vector<32x16xf32>, vector<16x16xf32> -> vector<16x16xf32>
    %cst_67 = arith.constant -1.000000e+09 : f32
    %191 = vector.broadcast %cst_67 : f32 to vector<16x16xf32>
    %192 = arith.select %3, %190, %191 : vector<16x16xi1>, vector<16x16xf32>
    %cst_68 = arith.constant dense<0xFF800000> : vector<16xf32>
    %193 = vector.multi_reduction <maximumf>, %192, %cst_68 [1] : vector<16x16xf32> to vector<16xf32>
    %194 = vector.shape_cast %193 : vector<16xf32> to vector<16x1xf32>
    %195 = vector.broadcast %194 : vector<16x1xf32> to vector<16x16xf32>
    %196 = arith.subf %192, %195 : vector<16x16xf32>
    %197 = math.exp %196 : vector<16x16xf32>
    %cst_69 = arith.constant dense<0.000000e+00> : vector<16xf32>
    %198 = vector.multi_reduction <add>, %197, %cst_69 [1] : vector<16x16xf32> to vector<16xf32>
    %199 = vector.shape_cast %198 : vector<16xf32> to vector<16x1xf32>
    %200 = tpu.reciprocal %199 {approx = true} : vector<16x1xf32> -> vector<16x1xf32>
    %201 = vector.broadcast %200 : vector<16x1xf32> to vector<16x16xf32>
    %202 = arith.mulf %197, %201 : vector<16x16xf32>
    %203 = vector.broadcast %11 : vector<1x32xf32> to vector<16x32xf32>
    %204 = arith.mulf %185, %203 : vector<16x32xf32>
    %cst_70 = arith.constant dense<0.000000e+00> : vector<16x32xf32>
    %205 = tpu.matmul %202, %204, %cst_70 {dimension_numbers = #tpu.dot_dimension_numbers<[1], [0], [0], [1], [0, 0, 1, 1], [], []>} : vector<16x16xf32>, vector<16x32xf32>, vector<16x32xf32> -> vector<16x32xf32>
    %206 = arith.addf %187, %205 : vector<16x32xf32>
    %207 = vector.broadcast %18 : vector<1x32xf32> to vector<16x32xf32>
    %208 = arith.mulf %183, %207 : vector<16x32xf32>
    %cst_71 = arith.constant dense<0.000000e+00> : vector<16x16xf32>
    %209 = tpu.matmul %208, %186, %cst_71 {dimension_numbers = #tpu.dot_dimension_numbers<[1], [0], [0], [1], [0, 0, 1, 1], [], []>} : vector<16x32xf32>, vector<32x16xf32>, vector<16x16xf32> -> vector<16x16xf32>
    %cst_72 = arith.constant -1.000000e+09 : f32
    %210 = vector.broadcast %cst_72 : f32 to vector<16x16xf32>
    %211 = arith.select %3, %209, %210 : vector<16x16xi1>, vector<16x16xf32>
    %cst_73 = arith.constant dense<0xFF800000> : vector<16xf32>
    %212 = vector.multi_reduction <maximumf>, %211, %cst_73 [1] : vector<16x16xf32> to vector<16xf32>
    %213 = vector.shape_cast %212 : vector<16xf32> to vector<16x1xf32>
    %214 = vector.broadcast %213 : vector<16x1xf32> to vector<16x16xf32>
    %215 = arith.subf %211, %214 : vector<16x16xf32>
    %216 = math.exp %215 : vector<16x16xf32>
    %cst_74 = arith.constant dense<0.000000e+00> : vector<16xf32>
    %217 = vector.multi_reduction <add>, %216, %cst_74 [1] : vector<16x16xf32> to vector<16xf32>
    %218 = vector.shape_cast %217 : vector<16xf32> to vector<16x1xf32>
    %219 = tpu.reciprocal %218 {approx = true} : vector<16x1xf32> -> vector<16x1xf32>
    %220 = vector.broadcast %219 : vector<16x1xf32> to vector<16x16xf32>
    %221 = arith.mulf %216, %220 : vector<16x16xf32>
    %222 = vector.broadcast %18 : vector<1x32xf32> to vector<16x32xf32>
    %223 = arith.mulf %185, %222 : vector<16x32xf32>
    %cst_75 = arith.constant dense<0.000000e+00> : vector<16x32xf32>
    %224 = tpu.matmul %221, %223, %cst_75 {dimension_numbers = #tpu.dot_dimension_numbers<[1], [0], [0], [1], [0, 0, 1, 1], [], []>} : vector<16x16xf32>, vector<16x32xf32>, vector<16x32xf32> -> vector<16x32xf32>
    %225 = arith.addf %206, %224 : vector<16x32xf32>
    %226 = vector.broadcast %25 : vector<1x32xf32> to vector<16x32xf32>
    %227 = arith.mulf %183, %226 : vector<16x32xf32>
    %cst_76 = arith.constant dense<0.000000e+00> : vector<16x16xf32>
    %228 = tpu.matmul %227, %186, %cst_76 {dimension_numbers = #tpu.dot_dimension_numbers<[1], [0], [0], [1], [0, 0, 1, 1], [], []>} : vector<16x32xf32>, vector<32x16xf32>, vector<16x16xf32> -> vector<16x16xf32>
    %cst_77 = arith.constant -1.000000e+09 : f32
    %229 = vector.broadcast %cst_77 : f32 to vector<16x16xf32>
    %230 = arith.select %3, %228, %229 : vector<16x16xi1>, vector<16x16xf32>
    %cst_78 = arith.constant dense<0xFF800000> : vector<16xf32>
    %231 = vector.multi_reduction <maximumf>, %230, %cst_78 [1] : vector<16x16xf32> to vector<16xf32>
    %232 = vector.shape_cast %231 : vector<16xf32> to vector<16x1xf32>
    %233 = vector.broadcast %232 : vector<16x1xf32> to vector<16x16xf32>
    %234 = arith.subf %230, %233 : vector<16x16xf32>
    %235 = math.exp %234 : vector<16x16xf32>
    %cst_79 = arith.constant dense<0.000000e+00> : vector<16xf32>
    %236 = vector.multi_reduction <add>, %235, %cst_79 [1] : vector<16x16xf32> to vector<16xf32>
    %237 = vector.shape_cast %236 : vector<16xf32> to vector<16x1xf32>
    %238 = tpu.reciprocal %237 {approx = true} : vector<16x1xf32> -> vector<16x1xf32>
    %239 = vector.broadcast %238 : vector<16x1xf32> to vector<16x16xf32>
    %240 = arith.mulf %235, %239 : vector<16x16xf32>
    %241 = vector.broadcast %25 : vector<1x32xf32> to vector<16x32xf32>
    %242 = arith.mulf %185, %241 : vector<16x32xf32>
    %cst_80 = arith.constant dense<0.000000e+00> : vector<16x32xf32>
    %243 = tpu.matmul %240, %242, %cst_80 {dimension_numbers = #tpu.dot_dimension_numbers<[1], [0], [0], [1], [0, 0, 1, 1], [], []>} : vector<16x16xf32>, vector<16x32xf32>, vector<16x32xf32> -> vector<16x32xf32>
    %244 = arith.addf %225, %243 : vector<16x32xf32>
    %245 = vector.broadcast %32 : vector<1x32xf32> to vector<16x32xf32>
    %246 = arith.mulf %183, %245 : vector<16x32xf32>
    %cst_81 = arith.constant dense<0.000000e+00> : vector<16x16xf32>
    %247 = tpu.matmul %246, %186, %cst_81 {dimension_numbers = #tpu.dot_dimension_numbers<[1], [0], [0], [1], [0, 0, 1, 1], [], []>} : vector<16x32xf32>, vector<32x16xf32>, vector<16x16xf32> -> vector<16x16xf32>
    %cst_82 = arith.constant -1.000000e+09 : f32
    %248 = vector.broadcast %cst_82 : f32 to vector<16x16xf32>
    %249 = arith.select %3, %247, %248 : vector<16x16xi1>, vector<16x16xf32>
    %cst_83 = arith.constant dense<0xFF800000> : vector<16xf32>
    %250 = vector.multi_reduction <maximumf>, %249, %cst_83 [1] : vector<16x16xf32> to vector<16xf32>
    %251 = vector.shape_cast %250 : vector<16xf32> to vector<16x1xf32>
    %252 = vector.broadcast %251 : vector<16x1xf32> to vector<16x16xf32>
    %253 = arith.subf %249, %252 : vector<16x16xf32>
    %254 = math.exp %253 : vector<16x16xf32>
    %cst_84 = arith.constant dense<0.000000e+00> : vector<16xf32>
    %255 = vector.multi_reduction <add>, %254, %cst_84 [1] : vector<16x16xf32> to vector<16xf32>
    %256 = vector.shape_cast %255 : vector<16xf32> to vector<16x1xf32>
    %257 = tpu.reciprocal %256 {approx = true} : vector<16x1xf32> -> vector<16x1xf32>
    %258 = vector.broadcast %257 : vector<16x1xf32> to vector<16x16xf32>
    %259 = arith.mulf %254, %258 : vector<16x16xf32>
    %260 = vector.broadcast %32 : vector<1x32xf32> to vector<16x32xf32>
    %261 = arith.mulf %185, %260 : vector<16x32xf32>
    %cst_85 = arith.constant dense<0.000000e+00> : vector<16x32xf32>
    %262 = tpu.matmul %259, %261, %cst_85 {dimension_numbers = #tpu.dot_dimension_numbers<[1], [0], [0], [1], [0, 0, 1, 1], [], []>} : vector<16x16xf32>, vector<16x32xf32>, vector<16x32xf32> -> vector<16x32xf32>
    %263 = arith.addf %244, %262 : vector<16x32xf32>
    %cst_86 = arith.constant dense<0.000000e+00> : vector<16x32xf32>
    %264 = tpu.matmul %182, %156, %cst_86 {dimension_numbers = #tpu.dot_dimension_numbers<[1], [0], [0], [1], [0, 0, 1, 1], [], []>} : vector<16x128xf32>, vector<128x32xf32>, vector<16x32xf32> -> vector<16x32xf32>
    %265 = vector.broadcast %158 : vector<1x32xf32> to vector<16x32xf32>
    %266 = arith.addf %264, %265 : vector<16x32xf32>
    %267 = arith.addf %150, %263 : vector<16x32xf32>
    %268 = arith.addf %267, %266 : vector<16x32xf32>
    %c0_87 = arith.constant 0 : index
    %c0_88 = arith.constant 0 : index
    %269 = vector.load %arg6[%c0_87, %c0_88] : memref<16x32xf32, #tpu.memory_space<vmem>>, vector<16x32xf32>
    tpu.vector_store %arg6[%c0_87, %c0_88], %268 {strides = array<i32>} : memref<16x32xf32, #tpu.memory_space<vmem>>, vector<16x32xf32>,
    return
  }
}

</mosaic_0001>

<bundles_post_ra>
// kernel: tpu_custom_call.1
= control target key start
LH: loop header
LB: loop body
LE: loop exit
PB: predicated region body
PF: predicated region fallthrough
CT: control target
= control target key end

     0   :  { %vm78_vm0 = vcmask 261120   ;;  %s3502_s0 = inlined_call_operand.vmem [shape: f32[16,32], index: 0, kind: input, shape index: {}]   ;;  %s3503_s1 = inlined_call_operand.vmem [shape: f32[16,16], index: 1, kind: input, shape index: {}]   ;;  %s3504_s2 = inlined_call_operand.vmem [shape: f32[2,32,224], index: 2, kind: input, shape index: {}]   ;;  %s3505_s3 = inlined_call_operand.vmem [shape: f32[2,1,224], index: 3, kind: input, shape index: {}]   ;;  %s3506_s4 = inlined_call_operand.vmem [shape: f32[2,128,32], index: 4, kind: input, shape index: {}]   ;;  %s3507_s5 = inlined_call_operand.vmem [shape: f32[2,1,32], index: 5, kind: input, shape index: {}]   ;;  %s3508_s6 = inlined_call_operand.hbm [shape: f32[16,32], index: 6, kind: output, shape index: {}]  }
   0x1   :  { %v2919_v0 = vld [vmem:[%s3502_s0] sm:$0xff]  ;;  %v2924_v1 = vld [vmem:[%s3502_s0 + $0x8] sm:$0xff] }
   0x2   :  { %11 = vsyncpa [#allocation3], 0  ;;  %v79_v2 = vsel %vm78_vm0, %v2919_v0, 0.0  ;;  %v82_v3 = vsel %vm78_vm0, %v2924_v1, 0.0  ;;  %v53_v14 = vld [vmem:[%s3504_s2 + $0x8] sm:$0xff]  ;;  %v55_v15 = vld [vmem:[%s3504_s2 + $0x18] sm:$0xff]  ;;  %v30_v37 = vlaneseq }
   0x3   :  { %80 = vadd.xlane.f32.xlu0 %v79_v2  ;;  %v2537_v16 = vpack.c.bf16 %v55_v15, %v53_v14  ;;  %v52_v17 = vld [vmem:[%s3504_s2] sm:$0xff]  ;;  %v54_v18 = vld [vmem:[%s3504_s2 + $0x10] sm:$0xff]  ;;  %v57_v20 = vld [vmem:[%s3504_s2 + $0x28] sm:$0xff]  ;;  %v2875_v25 = vmov 0.0   ;;  %s2876_s19 = smov 96   ;;  %s2877_s20 = smov 64  }
   0x4   :  { %v2539_v19 = vpack.c.bf16 %v54_v18, %v52_v17  ;;  %v59_v21 = vld [vmem:[%s3504_s2 + $0x38] sm:$0xff]  ;;  %v56_v22 = vld [vmem:[%s3504_s2 + $0x20] sm:$0xff]  ;;  %v58_v24 = vld [vmem:[%s3504_s2 + $0x30] sm:$0xff]  ;;  %187 = vmatprep.mubr.f32.mxu1 %v2875_v25  ;;  %v2962_v38 = vshrl.u32 %v30_v37, 7  ;;  %v2964_v39 = vand.u32 127, %v30_v37  ;;  %vm297_vm10 = vcmask 130048  }
   0x5   :  { %2538 = vmatprep.subr.bf16.mxu1 %v2537_v16  ;;  %v2541_v23 = vpack.c.bf16 %v59_v21, %v57_v20  ;;  %v2543_v26 = vpack.c.bf16 %v58_v24, %v56_v22  ;;  %v2970_v41 = vld [vmem:[%s3505_s3] sm:$0x3]  ;;  %vm3012_vm8 = vmpackc.low %vm78_vm0, %vm78_vm0  ;;  %s2878_s12 = smov [#allocation2]  }
   0x6   :  { %2540 = vmatpush1.bf16.msra.mxu1 %v2539_v19  ;;  %v113_v40 = vsub.s32 1, %v2962_v38  ;;  %vm42_vm1 = vcmp.ge.s32.totalorder %v2964_v39, 16  ;;  %vm43_vm2 = vcmp.lt.s32.totalorder %v2964_v39, 24  ;;  %vm33_vm3 = vcmp.lt.s32.totalorder %v2964_v39, 8  ;;  %s2160_s13 = sshll.u32 %s2878_s12, 4  ;;  %s2161_s13 = int_to_ptr.vmem [resolvable:$true] %s2160_s13 }
   0x7   :  { %83 = vadd.xlane.f32.xlu0 %v82_v3  ;;  %2542 = vmatprep.subr.bf16.mxu1 %v2541_v23  ;;  %vm44_vm4 = vmand %vm42_vm1, %vm43_vm2  ;;  %v2981_v45 = vsel %vm33_vm3, 1.0, %v2875_v25  ;;  %vm37_vm5 = vcmp.ge.s32.totalorder %v2964_v39, 8  ;;  %vm38_vm6 = vcmp.lt.s32.totalorder %v2964_v39, 16  ;;  %vm47_vm12 = vcmp.ge.s32.totalorder %v2964_v39, 24  ;;  %p2856_p1 = scmp.lt.s32.totalorder %s2161_s13, %s2161_s13 }
   0x8   :  { %v114_v42 = vrot.slane %v2970_v41, %v113_v40  ;;  %v2984_v46 = vsel %vm44_vm4, 1.0, %v2875_v25  ;;  %vm39_vm7 = vmand %vm37_vm5, %vm38_vm6  ;;  %vm48_vm13 = vcmp.lt.s32.totalorder %v2964_v39, 32 }
   0x9   :  { %v3004_v54 = vsel %vm39_vm7, 1.0, %v2875_v25  ;;  %vm49_vm14 = vmand %vm47_vm12, %vm48_vm13 }
   0xa   :  { %2544 = vmatpush1.bf16.msra.mxu1 %v2543_v26 }
  0x90   :  { %v81_v4 = vpop.xlane.xlu0 %80 }
  0x91   :  { %v86_v5 = vmul.f32 0.03125, %v81_v4 }
  0x93   :  { %v88_v6 = vsub.f32 %v2919_v0, %v86_v5 }
  0x94   :  { %v84_v7 = vpop.xlane.xlu0 %83 }
  0x95   :  { %v87_v8 = vmul.f32 0.03125, %v84_v7  ;;  %v90_v9 = vmul.f32 %v88_v6, %v88_v6  ;;  %v3057_v7 = vld [vmem:[%s3503_s1 + $0x8] sm:$0xff] }
  0x96   :  { %vm29_vm11 = vcmp.ne.f32.partialorder %v3057_v7, 0.0 }
  0x97   :  { %v89_v10 = vsub.f32 %v2924_v1, %v87_v8  ;;  %v92_v11 = vsel %vm78_vm0, %v90_v9, 0.0 }
  0x98   :  { %93 = vadd.xlane.f32.xlu1 %v92_v11 }
  0x99   :  { %v91_v12 = vmul.f32 %v89_v10, %v89_v10 }
  0x9b   :  { %v95_v13 = vsel %vm78_vm0, %v91_v12, 0.0 }
  0x9c   :  { %96 = vadd.xlane.f32.xlu1 %v95_v13 }
 0x125   :  { %v94_v27 = vpop.xlane.xlu1 %93 }
 0x126   :  { %v98_v28 = vmul.f32 0.03125, %v94_v27 }
 0x128   :  { %v100_v29 = vadd.f32 1e-05, %v98_v28 }
 0x129   :  { %v97_v30 = vpop.xlane.xlu1 %96 }
 0x12a   :  { %2777 = vrsqrt.f32 %v100_v29  ;;  %v99_v31 = vmul.f32 0.03125, %v97_v30 }
 0x12c   :  { %v101_v32 = vadd.f32 1e-05, %v99_v31 }
 0x12e   :  { %2779 = vrsqrt.f32 %v101_v32 }
 0x134   :  { %v2778_v33 = vpop.eup %2777 }
 0x135   :  { %v104_v34 = vmul.f32 %v2778_v33, %v88_v6  ;;  %v3052_v6 = vld [vmem:[%s3503_s1] sm:$0xff] }
 0x136   :  { %vm28_vm9 = vcmp.ne.f32.partialorder %v3052_v6, 0.0 }
 0x137   :  { %2175 = vmatmul.mubr.msk.f32.vlgmr.msra.gmra.mrb[0].mxu1 %vm78_vm0, %v104_v34 }
 0x138   :  { %v2780_v35 = vpop.eup %2779  ;;  %193 = vmatprep.mubr.f32.mxu1 %v2875_v25 }
 0x139   :  { %v105_v36 = vmul.f32 %v2780_v35, %v89_v10 }
 0x13b   :  { %2176 = vmatmul.mubr.msk.f32.gmra.mrb[2].mxu1 %vm78_vm0, %v105_v36 }
 0x20a   :  { %v2978_v43 = vpop.f32.mrb[0].mxu1 }
 0x20b   :  { %v191_v44 = vpop.f32.mrb[1].mxu1 }
 0x20c   :  { %v2986_v47 = vadd.f32 %v191_v44, %v114_v42 }
 0x20e   :  { %v2988_v48 = vpop.f32.mrb[2].mxu1  ;;  %v202_v49 = vmul.f32 %v2981_v45, %v2986_v47  ;;  %v617_v50 = vmul.f32 %v2984_v46, %v2986_v47  ;;  %v326_v62 = vmul.f32 %v3004_v54, %v2986_v47 }
 0x20f   :  { %v197_v51 = vpop.f32.mrb[3].mxu1 }
 0x210   :  { %v2994_v52 = vadd.f32 %v197_v51, %v114_v42  ;;  %2359 = vmatprep.mubr.msk.f32.mxu1 %vm78_vm0, %v202_v49  ;;  %2387 = vmatprep.mubr.msk.f32.mxu0 %vm78_vm0, %v617_v50 }
 0x212   :  { %v2727_v53 = vpack.i.bf16 %v2994_v52, %v2986_v47  ;;  %v203_v60 = vmul.f32 %v2981_v45, %v2994_v52  ;;  %v618_v61 = vmul.f32 %v2984_v46, %v2994_v52  ;;  %v327_v63 = vmul.f32 %v3004_v54, %v2994_v52 }
 0x214   :  { %2728 = vrot.lane.b32.xlu0 %v2727_v53, %s2876_s19 }
 0x218   :  { %434 = vrot.lane.b32.xlu0 %v3004_v54, %s2877_s20 }
 0x21c   :  { %725 = vrot.lane.b32.xlu0 %v2984_v46, %s2877_s20 }
 0x286   :  { %v2729_v55 = vpop.permute.xlu0 %2728 }
 0x287   :  { %v2731_v56 = vunpack.i.h.bf16 %v2729_v55  ;;  %v2730_v57 = vunpack.i.l.bf16 %v2729_v55 }
 0x289   :  { %v3016_v59 = vpack.c.bf16 %v2731_v56, %v2730_v57 }
 0x28a   :  { %v3087_v50 = vpop.permute.xlu0 %434 }
 0x28b   :  { %2547 = vmatprep.subr.msk.bf16.mxu1 %vm3012_vm8, %v3016_v59  ;;  %2567 = vmatprep.subr.msk.bf16.mxu0 %vm3012_vm8, %v3016_v59 }
 0x28c   :  { %2550 = vmatpush3.bf16.xpose.msk.msra.mxu1 %vm3012_vm8, %v3016_v59  ;;  %2570 = vmatpush3.bf16.xpose.msk.msra.mxu0 %vm3012_vm8, %v3016_v59 }
 0x28d   :  { %2553 = vmatprep.subr.msk.bf16.mxu1 %vm3012_vm8, %v3016_v59 }
 0x293   :  { %2360 = vmatmul.mubr.msk.f32.vlgmr.msra.gmra.mrb[4].mxu1 %vm78_vm0, %v203_v60  ;;  %2388 = vmatmul.mubr.msk.f32.vlgmr.msra.gmra.mrb[0].mxu0 %vm78_vm0, %v618_v61 }
 0x294   :  { %2556 = vmatpush3.bf16.xpose.msk.msra.mxu1 %vm3012_vm8, %v3016_v59  ;;  %2366 = vmatprep.mubr.msk.f32.mxu1 %vm78_vm0, %v326_v62  ;;  %v3097_v62 = vpop.permute.xlu0 %725 }
 0x295   :  { %1247 = vmatprep.mubr.f32.mxu0 %v2875_v25 }
 0x29b   :  { %2367 = vmatmul.mubr.msk.f32.vlgmr.msra.gmra.mrb[6].mxu1 %vm78_vm0, %v327_v63 }
 0x366   :  { %v2361_v2 = vpop.f32.mrb[4].mxu1  ;;  %v2389_v3 = vpop.f32.mrb[0].mxu0 }
 0x367   :  { %v286_v4 = vpop.f32.mrb[5].mxu1  ;;  %v691_v5 = vpop.f32.mrb[1].mxu0  ;;  %v296_v16 = vsel %vm29_vm11, %v2361_v2, -1e+09  ;;  %v701_v20 = vsel %vm29_vm11, %v2389_v3, -1e+09  ;;  %v728_v2 = vmul.f32 %v3097_v62, %v2986_v47  ;;  %v729_v3 = vmul.f32 %v3097_v62, %v2994_v52 }
 0x368   :  { %v295_v14 = vsel %vm28_vm9, %v286_v4, -1e+09  ;;  %v301_v17 = vsel %vm297_vm10, %v296_v16, -inf  ;;  %v700_v18 = vsel %vm28_vm9, %v691_v5, -1e+09  ;;  %v705_v21 = vsel %vm297_vm10, %v701_v20, -inf }
 0x369   :  { %v298_v15 = vsel %vm297_vm10, %v295_v14, -inf  ;;  %v702_v19 = vsel %vm297_vm10, %v700_v18, -inf }
 0x36e   :  { %v2368_v8 = vpop.f32.mrb[6].mxu1 }
 0x36f   :  { %v400_v9 = vpop.f32.mrb[7].mxu1  ;;  %v410_v12 = vsel %vm29_vm11, %v2368_v8, -1e+09 }
 0x370   :  { %v409_v10 = vsel %vm28_vm9, %v400_v9, -1e+09  ;;  %v414_v13 = vsel %vm297_vm10, %v410_v12, -inf }
 0x371   :  { %v411_v11 = vsel %vm297_vm10, %v409_v10, -inf }
 0x372   :  { %412 = vmax.xlane.f32.xlu1 %v411_v11 }
 0x376   :  { %415 = vmax.xlane.f32.xlu1 %v414_v13 }
 0x37a   :  { %299 = vmax.xlane.f32.xlu1 %v298_v15  ;;  %v437_v15 = vmul.f32 %v3087_v50, %v2986_v47 }
 0x37e   :  { %302 = vmax.xlane.f32.xlu1 %v301_v17 }
 0x382   :  { %703 = vmax.xlane.f32.xlu1 %v702_v19 }
 0x386   :  { %706 = vmax.xlane.f32.xlu1 %v705_v21 }
 0x397   :  { %321 = vrot.lane.b32.xlu1 %v2981_v45, %s2877_s20 }
 0x3ff   :  { %v413_v22 = vpop.xlane.xlu1 %412 }
 0x400   :  { %v417_v51 = vsub.f32 %v409_v10, %v413_v22  ;;  %v2742_v10 = vpack.i.bf16 %v729_v3, %v728_v2 }
 0x402   :  { %v419_v57 = vmul.f32 1.442695, %v417_v51 }
 0x403   :  { %v416_v23 = vpop.xlane.xlu1 %415 }
 0x404   :  { %v418_v24 = vsub.f32 %v410_v12, %v416_v23 }
 0x406   :  { %v421_v26 = vmul.f32 1.442695, %v418_v24 }
 0x407   :  { %v300_v27 = vpop.xlane.xlu1 %299 }
 0x408   :  { %2781 = vpow2.f32 %v421_v26  ;;  %v304_v33 = vsub.f32 %v295_v14, %v300_v27 }
 0x40a   :  { %v306_v37 = vmul.f32 1.442695, %v304_v33 }
 0x40b   :  { %v303_v28 = vpop.xlane.xlu1 %302 }
 0x40c   :  { %v305_v29 = vsub.f32 %v296_v16, %v303_v28  ;;  %v438_v16 = vmul.f32 %v3087_v50, %v2994_v52 }
 0x40e   :  { %v308_v30 = vmul.f32 1.442695, %v305_v29  ;;  %v2732_v17 = vpack.i.bf16 %v438_v16, %v437_v15 }
 0x40f   :  { %v704_v31 = vpop.xlane.xlu1 %703 }
 0x410   :  { %2783 = vpow2.f32 %v308_v30  ;;  %v708_v42 = vsub.f32 %v700_v18, %v704_v31 }
 0x412   :  { %v3081_v32 = vpop.eup %2781  ;;  %v710_v53 = vmul.f32 1.442695, %v708_v42 }
 0x413   :  { %v707_v34 = vpop.xlane.xlu1 %706  ;;  %v426_v35 = vsel %vm297_vm10, %v3081_v32, 0.0 }
 0x414   :  { %v709_v36 = vsub.f32 %v701_v20, %v707_v34  ;;  %427 = vadd.xlane.f32.xlu1 %v426_v35 }
 0x416   :  { %v712_v44 = vmul.f32 1.442695, %v709_v36 }
 0x417   :  { %v3091_v56 = vpop.permute.xlu1 %321 }
 0x418   :  { %2785 = vpow2.f32 %v712_v44  ;;  %v324_v60 = vmul.f32 %v3091_v56, %v2986_v47  ;;  %v325_v61 = vmul.f32 %v3091_v56, %v2994_v52 }
 0x419   :  { %2787 = vpow2.f32 %v306_v37 }
 0x41a   :  { %v3085_v49 = vpop.eup %2783  ;;  %2789 = vpow2.f32 %v710_v53  ;;  %v2737_v5 = vpack.i.bf16 %v325_v61, %v324_v60 }
 0x41b   :  { %v313_v55 = vsel %vm297_vm10, %v3085_v49, 0.0  ;;  %2791 = vpow2.f32 %v419_v57 }
 0x41c   :  { %314 = vadd.xlane.f32.xlu0 %v313_v55 }
 0x422   :  { %v3099_v63 = vpop.eup %2785 }
 0x423   :  { %v717_v4 = vsel %vm297_vm10, %v3099_v63, 0.0  ;;  %v2788_v8 = vpop.eup %2787 }
 0x424   :  { %718 = vadd.xlane.f32.xlu0 %v717_v4  ;;  %v310_v9 = vsel %vm297_vm10, %v2788_v8, 0.0  ;;  %v2790_v11 = vpop.eup %2789  ;;  %v3130_v4 = vsel %vm49_vm14, 1.0, %v2875_v25 }
 0x425   :  { %2738 = vrot.lane.b32.xlu1 %v2737_v5, %s2877_s20  ;;  %v714_v12 = vsel %vm297_vm10, %v2790_v11, 0.0  ;;  %v2792_v13 = vpop.eup %2791  ;;  %v821_v39 = vmul.f32 %v3130_v4, %v2986_v47  ;;  %v822_v5 = vmul.f32 %v3130_v4, %v2994_v52 }
 0x426   :  { %v423_v14 = vsel %vm297_vm10, %v2792_v13, 0.0 }
 0x428   :  { %311 = vadd.xlane.f32.xlu0 %v310_v9 }
 0x429   :  { %2743 = vrot.lane.b32.xlu1 %v2742_v10, %s2877_s20 }
 0x42c   :  { %715 = vadd.xlane.f32.xlu0 %v714_v12 }
 0x430   :  { %424 = vadd.xlane.f32.xlu0 %v423_v14 }
 0x446   :  { %2733 = vrot.lane.b32.xlu0 %v2732_v17, %s2877_s20 }
 0x4a1   :  { %v428_v21 = vpop.xlane.xlu1 %427 }
 0x4a2   :  { %2793 = vrcp.f32 %v428_v21 }
 0x4a5   :  { %v2739_v24 = vpop.permute.xlu1 %2738 }
 0x4a6   :  { %v2741_v27 = vunpack.i.h.bf16 %v2739_v24  ;;  %v2740_v28 = vunpack.i.l.bf16 %v2739_v24 }
 0x4a8   :  { %v2561_v35 = vpack.c.bf16 %v2741_v27, %v2740_v28 }
 0x4a9   :  { %v315_v18 = vpop.xlane.xlu0 %314  ;;  %v2744_v33 = vpop.permute.xlu1 %2743 }
 0x4aa   :  { %v2746_v42 = vunpack.i.h.bf16 %v2744_v33  ;;  %v2745_v44 = vunpack.i.l.bf16 %v2744_v33 }
 0x4ac   :  { %v2794_v34 = vpop.eup %2793  ;;  %v2571_v57 = vpack.c.bf16 %v2746_v42, %v2745_v44  ;;  %v63_v44 = vld [vmem:[%s3506_s4 + $0x10] sm:$0xff] }
 0x4ad   :  { %v432_v53 = vmul.f32 %v2794_v34, %v3081_v32 }
 0x4b1   :  { %v719_v19 = vpop.xlane.xlu0 %718 }
 0x4b5   :  { %v312_v20 = vpop.xlane.xlu0 %311 }
 0x4b6   :  { %2795 = vrcp.f32 %v312_v20 }
 0x4b9   :  { %v716_v22 = vpop.xlane.xlu0 %715 }
 0x4bd   :  { %v425_v23 = vpop.xlane.xlu0 %424 }
 0x4be   :  { %2797 = vrcp.f32 %v425_v23 }
 0x4bf   :  { %2799 = vrcp.f32 %v315_v18 }
 0x4c0   :  { %2801 = vrcp.f32 %v716_v22  ;;  %v2796_v36 = vpop.eup %2795 }
 0x4c1   :  { %v2734_v26 = vpop.permute.xlu0 %2733  ;;  %v318_v55 = vmul.f32 %v2796_v36, %v2788_v8  ;;  %2803 = vrcp.f32 %v719_v19 }
 0x4c2   :  { %v2736_v29 = vunpack.i.h.bf16 %v2734_v26  ;;  %v2735_v30 = vunpack.i.l.bf16 %v2734_v26 }
 0x4c4   :  { %v2557_v31 = vpack.c.bf16 %v2736_v29, %v2735_v30  ;;  %v109_v29 = vsub.s32 0, %v2962_v38  ;;  %v2214_v38 = vld [vmem:[%s3506_s4 + $0x98] sm:$0xff] }
 0x4c6   :  { %2558 = vmatprep.subr.bf16.mxu1 %v2557_v31  ;;  %v110_v34 = vrot.slane %v2970_v41, %v109_v29 }
 0x4c7   :  { %2560 = vmatpush3.bf16.msra.mxu1 %v2557_v31  ;;  %v61_v31 = vld [vmem:[%s3506_s4] sm:$0xff] }
 0x4c8   :  { %v2798_v37 = vpop.eup %2797  ;;  %2562 = vmatprep.subr.bf16.mxu1 %v2561_v35  ;;  %v190_v42 = vadd.f32 %v2978_v43, %v110_v34  ;;  %v65_v43 = vld [vmem:[%s3506_s4 + $0x20] sm:$0xff] }
 0x4c9   :  { %v431_v51 = vmul.f32 %v2798_v37, %v2792_v13  ;;  %v2800_v60 = vpop.eup %2799 }
 0x4ca   :  { %v2802_v61 = vpop.eup %2801  ;;  %v319_v2 = vmul.f32 %v2800_v60, %v3085_v49  ;;  %v200_v60 = vmax.f32 %v190_v42, 0.0  ;;  %v2203_v42 = vld [vmem:[%s3504_s2 + $0x48] sm:$0xff] }
 0x4cb   :  { %2373 = vmatprep.mubr.msk.f32.mxu1 %vm297_vm10, %v431_v51  ;;  %v722_v32 = vmul.f32 %v2802_v61, %v2790_v11  ;;  %v2804_v3 = vpop.eup %2803  ;;  %v64_v51 = vld [vmem:[%s3506_s4 + $0x18] sm:$0xff]  ;;  %v66_v61 = vld [vmem:[%s3506_s4 + $0x28] sm:$0xff] }
 0x4cc   :  { %2374 = vmatmul.mubr.msk.f32.vlgmr.msra.gmra.mrb[8].mxu1 %vm297_vm10, %v432_v53  ;;  %v723_v49 = vmul.f32 %v2804_v3, %v3099_v63  ;;  %v2589_v41 = vpack.c.bf16 %v64_v51, %v63_v44  ;;  %v68_v3 = vld [vmem:[%s3506_s4 + $0x38] sm:$0xff] }
 0x4cd   :  { %2564 = vmatpush3.bf16.msra.mxu1 %v2561_v35  ;;  %2380 = vmatprep.mubr.msk.f32.mxu1 %vm297_vm10, %v318_v55  ;;  %v2205_v44 = vld [vmem:[%s3504_s2 + $0x58] sm:$0xff] }
 0x4ce   :  { %2572 = vmatprep.subr.bf16.mxu1 %v2571_v57  ;;  %v2617_v51 = vpack.c.bf16 %v2205_v44, %v2203_v42 }
 0x4d0   :  { %2618 = vmatprep.subr.bf16.mxu0 %v2617_v51 }
 0x4d4   :  { %2381 = vmatmul.mubr.msk.f32.vlgmr.msra.gmra.mrb[8].mxu1 %vm297_vm10, %v319_v2  ;;  %v2593_v2 = vpack.c.bf16 %v66_v61, %v65_v43  ;;  %v2206_v43 = vld [vmem:[%s3504_s2 + $0x60] sm:$0xff] }
 0x4d5   :  { %2574 = vmatpush3.bf16.msra.mxu1 %v2571_v57  ;;  %2394 = vmatprep.mubr.msk.f32.mxu1 %vm297_vm10, %v722_v32  ;;  %v67_v32 = vld [vmem:[%s3506_s4 + $0x30] sm:$0xff] }
 0x4d6   :  { %2577 = vmatprep.subr.msk.bf16.mxu1 %vm3012_vm8, %v3016_v59 }
 0x4dc   :  { %2395 = vmatmul.mubr.msk.f32.vlgmr.msra.gmra.mrb[8].mxu1 %vm297_vm10, %v723_v49  ;;  %v2597_v49 = vpack.c.bf16 %v68_v3, %v67_v32 }
 0x4dd   :  { %2401 = vmatprep.mubr.msk.f32.mxu1 %vm78_vm0, %v821_v39  ;;  %v69_v39 = vld [vmem:[%s3506_s4 + $0x40] sm:$0xff] }
 0x4de   :  { %2580 = vmatpush3.bf16.xpose.msk.msra.mxu1 %vm3012_vm8, %v3016_v59 }
 0x4e5   :  { %2402 = vmatmul.mubr.msk.f32.vlgmr.msra.gmra.mrb[10].mxu1 %vm78_vm0, %v822_v5  ;;  %v70_v5 = vld [vmem:[%s3506_s4 + $0x48] sm:$0xff] }
 0x5b8   :  { %v2403_v8 = vpop.f32.mrb[10].mxu1 }
 0x5b9   :  { %v905_v63 = vsel %vm29_vm11, %v2403_v8, -1e+09  ;;  %v895_v9 = vpop.f32.mrb[11].mxu1  ;;  %v2601_v8 = vpack.c.bf16 %v70_v5, %v69_v39 }
 0x5ba   :  { %v904_v10 = vsel %vm28_vm9, %v895_v9, -1e+09  ;;  %v909_v11 = vsel %vm297_vm10, %v905_v63, -inf  ;;  %v72_v9 = vld [vmem:[%s3506_s4 + $0x58] sm:$0xff] }
 0x5bb   :  { %910 = vmax.xlane.f32.xlu0 %v909_v11  ;;  %v906_v12 = vsel %vm297_vm10, %v904_v10, -inf  ;;  %v73_v11 = vld [vmem:[%s3506_s4 + $0x60] sm:$0xff] }
 0x5bc   :  { %907 = vmax.xlane.f32.xlu1 %v906_v12  ;;  %v74_v12 = vld [vmem:[%s3506_s4 + $0x68] sm:$0xff] }
 0x5d1   :  { %929 = vrot.lane.b32.xlu0 %v3130_v4, %s2877_s20 }
 0x648   :  { %v911_v59 = vpop.xlane.xlu0 %910 }
 0x649   :  { %v913_v13 = vsub.f32 %v905_v63, %v911_v59  ;;  %v908_v14 = vpop.xlane.xlu1 %907  ;;  %v71_v63 = vld [vmem:[%s3506_s4 + $0x50] sm:$0xff]  ;;  %v2609_v59 = vpack.c.bf16 %v74_v12, %v73_v11 }
 0x64a   :  { %v912_v15 = vsub.f32 %v904_v10, %v908_v14  ;;  %v2605_v10 = vpack.c.bf16 %v72_v9, %v71_v63  ;;  %v76_v14 = vld [vmem:[%s3506_s4 + $0x78] sm:$0xff] }
 0x64b   :  { %v916_v16 = vmul.f32 1.442695, %v913_v13  ;;  %v75_v13 = vld [vmem:[%s3506_s4 + $0x70] sm:$0xff] }
 0x64c   :  { %v914_v17 = vmul.f32 1.442695, %v912_v15  ;;  %v3153_v22 = vpop.permute.xlu0 %929  ;;  %v2613_v15 = vpack.c.bf16 %v76_v14, %v75_v13 }
 0x64d   :  { %2805 = vpow2.f32 %v916_v16  ;;  %v932_v23 = vmul.f32 %v3153_v22, %v2986_v47  ;;  %v933_v24 = vmul.f32 %v3153_v22, %v2994_v52  ;;  %v62_v47 = vld [vmem:[%s3506_s4 + $0x8] sm:$0xff]  ;;  %v196_v16 = vadd.f32 %v2988_v48, %v110_v34 }
 0x64e   :  { %2807 = vpow2.f32 %v914_v17  ;;  %v2585_v36 = vpack.c.bf16 %v62_v47, %v61_v31 }
 0x64f   :  { %v2747_v26 = vpack.i.bf16 %v933_v24, %v932_v23  ;;  %v201_v17 = vmax.f32 %v196_v16, 0.0 }
 0x657   :  { %v2806_v18 = vpop.eup %2805 }
 0x658   :  { %v921_v19 = vsel %vm297_vm10, %v2806_v18, 0.0  ;;  %v2808_v20 = vpop.eup %2807 }
 0x659   :  { %922 = vadd.xlane.f32.xlu1 %v921_v19  ;;  %v918_v21 = vsel %vm297_vm10, %v2808_v20, 0.0 }
 0x65d   :  { %919 = vadd.xlane.f32.xlu1 %v918_v21 }
 0x66e   :  { %2748 = vrot.lane.b32.xlu1 %v2747_v26, %s2877_s20 }
 0x6e6   :  { %v923_v27 = vpop.xlane.xlu1 %922 }
 0x6e7   :  { %2809 = vrcp.f32 %v923_v27 }
 0x6ea   :  { %v920_v28 = vpop.xlane.xlu1 %919 }
 0x6eb   :  { %2811 = vrcp.f32 %v920_v28 }
 0x6ee   :  { %v2749_v30 = vpop.permute.xlu1 %2748 }
 0x6ef   :  { %v2751_v33 = vunpack.i.h.bf16 %v2749_v30  ;;  %v2750_v52 = vunpack.i.l.bf16 %v2749_v30 }
 0x6f1   :  { %v2581_v35 = vpack.c.bf16 %v2751_v33, %v2750_v52  ;;  %v2810_v37 = vpop.eup %2809 }
 0x6f2   :  { %v927_v57 = vmul.f32 %v2810_v37, %v2806_v18  ;;  %v2201_v18 = vld [vmem:[%s3507_s5] ss:$0 sm:$0xff] }
 0x6f3   :  { %2582 = vmatprep.subr.bf16.mxu1 %v2581_v35 }
 0x6f4   :  { %2584 = vmatpush3.bf16.msra.mxu1 %v2581_v35 }
 0x6f5   :  { %v2812_v53 = vpop.eup %2811  ;;  %2586 = vmatprep.subr.bf16.mxu1 %v2585_v36 }
 0x6f6   :  { %v926_v55 = vmul.f32 %v2812_v53, %v2808_v20  ;;  %v2202_v53 = vld [vmem:[%s3504_s2 + $0x40] sm:$0xff] }
 0x6f8   :  { %2408 = vmatprep.mubr.msk.f32.mxu1 %vm297_vm10, %v926_v55  ;;  %v2204_v55 = vld [vmem:[%s3504_s2 + $0x50] sm:$0xff] }
 0x6f9   :  { %2409 = vmatmul.mubr.msk.f32.vlgmr.msra.gmra.mrb[8].mxu1 %vm297_vm10, %v927_v57  ;;  %v2619_v57 = vpack.c.bf16 %v2204_v55, %v2202_v53 }
 0x6fa   :  { %2588 = vmatpush3.bf16.msra.mxu1 %v2585_v36  ;;  %2443 = vmatprep.mubr.f32.mxu1 %v200_v60  ;;  %v2209_v60 = vld [vmem:[%s3504_s2 + $0x78] sm:$0xff] }
 0x6fb   :  { %2590 = vmatprep.subr.bf16.mxu1 %v2589_v41  ;;  %2620 = vmatpush1.bf16.msra.mxu0 %v2619_v57 }
 0x6fe   :  { %2592 = vmatpush3.bf16.msra.mxu1 %v2589_v41  ;;  %v2207_v41 = vld [vmem:[%s3504_s2 + $0x68] sm:$0xff] }
 0x6ff   :  { %2594 = vmatprep.subr.bf16.mxu1 %v2593_v2  ;;  %v2621_v61 = vpack.c.bf16 %v2209_v60, %v2207_v41 }
 0x701   :  { %2622 = vmatprep.subr.bf16.mxu0 %v2621_v61 }
 0x702   :  { %2596 = vmatpush3.bf16.msra.mxu1 %v2593_v2  ;;  %v2208_v2 = vld [vmem:[%s3504_s2 + $0x70] sm:$0xff] }
 0x703   :  { %2598 = vmatprep.subr.bf16.mxu1 %v2597_v49  ;;  %v2623_v32 = vpack.c.bf16 %v2208_v2, %v2206_v43 }
 0x705   :  { %2624 = vmatpush1.bf16.msra.mxu0 %v2623_v32 }
 0x706   :  { %2600 = vmatpush3.bf16.msra.mxu1 %v2597_v49 }
 0x707   :  { %2602 = vmatprep.subr.bf16.mxu1 %v2601_v8 }
 0x70a   :  { %2604 = vmatpush3.bf16.msra.mxu1 %v2601_v8 }
 0x70b   :  { %2606 = vmatprep.subr.bf16.mxu1 %v2605_v10 }
 0x70e   :  { %2608 = vmatpush3.bf16.msra.mxu1 %v2605_v10 }
 0x70f   :  { %2610 = vmatprep.subr.bf16.mxu1 %v2609_v59 }
 0x712   :  { %2612 = vmatpush3.bf16.msra.mxu1 %v2609_v59  ;;  %v3259_v59 = vld [vmem:[%s3505_s3 + $0x2] sm:$0x3] }
 0x713   :  { %2614 = vmatprep.subr.bf16.mxu1 %v2613_v15  ;;  %v1174_v13 = vrot.slane %v3259_v59, %v113_v40 }
 0x716   :  { %2616 = vmatpush3.bf16.msra.mxu1 %v2613_v15 }
 0x719   :  { %2444 = vmatmul.mubr.f32.vlgmr.msra.gmra.mrb[8].mxu1 %v201_v17 }
 0x7ec   :  { %v2445_v19 = vpop.f32.mrb[8].mxu1 }
 0x7ed   :  { %v3219_v20 = vadd.f32 %v2445_v19, %v2201_v18  ;;  %v2697_v21 = vadd.f32 %v2445_v19, %v2924_v1  ;;  %v1097_v23 = vpop.f32.mrb[9].mxu1 }
 0x7ee   :  { %v3222_v24 = vadd.f32 %v2201_v18, %v1097_v23  ;;  %v2699_v26 = vadd.f32 %v1097_v23, %v2919_v0 }
 0x7ef   :  { %v2698_v27 = vadd.f32 %v2697_v21, %v2201_v18 }
 0x7f0   :  { %v2700_v48 = vadd.f32 %v2699_v26, %v2201_v18 }
 0x7f1   :  { %v1143_v28 = vsel %vm78_vm0, %v2698_v27, 0.0 }
 0x7f2   :  { %1144 = vadd.xlane.f32.xlu1 %v1143_v28  ;;  %v1140_v30 = vsel %vm78_vm0, %v2700_v48, 0.0 }
 0x7f3   :  { %1141 = vadd.xlane.f32.xlu0 %v1140_v30 }
 0x87f   :  { %v1145_v31 = vpop.xlane.xlu1 %1144 }
 0x880   :  { %v1147_v47 = vmul.f32 0.03125, %v1145_v31  ;;  %v1142_v33 = vpop.xlane.xlu0 %1141 }
 0x881   :  { %v1146_v52 = vmul.f32 0.03125, %v1142_v33 }
 0x882   :  { %v1149_v34 = vsub.f32 %v2698_v27, %v1147_v47 }
 0x883   :  { %v1148_v35 = vsub.f32 %v2700_v48, %v1146_v52 }
 0x884   :  { %v1151_v37 = vmul.f32 %v1149_v34, %v1149_v34 }
 0x885   :  { %v1150_v1 = vmul.f32 %v1148_v35, %v1148_v35 }
 0x886   :  { %v1155_v0 = vsel %vm78_vm0, %v1151_v37, 0.0 }
 0x887   :  { %v1152_v36 = vsel %vm78_vm0, %v1150_v1, 0.0 }
 0x888   :  { %1153 = vadd.xlane.f32.xlu0 %v1152_v36 }
 0x88c   :  { %1156 = vadd.xlane.f32.xlu0 %v1155_v0 }
 0x915   :  { %v1154_v3 = vpop.xlane.xlu0 %1153 }
 0x916   :  { %v1158_v49 = vmul.f32 0.03125, %v1154_v3 }
 0x918   :  { %v1160_v39 = vadd.f32 1e-05, %v1158_v49 }
 0x919   :  { %v1157_v5 = vpop.xlane.xlu0 %1156 }
 0x91a   :  { %2813 = vrsqrt.f32 %v1160_v39  ;;  %v1159_v8 = vmul.f32 0.03125, %v1157_v5 }
 0x91c   :  { %v1161_v63 = vadd.f32 1e-05, %v1159_v8 }
 0x91e   :  { %2815 = vrsqrt.f32 %v1161_v63 }
 0x924   :  { %v2814_v9 = vpop.eup %2813 }
 0x925   :  { %v1164_v10 = vmul.f32 %v2814_v9, %v1148_v35 }
 0x927   :  { %2228 = vmatmul.mubr.msk.f32.vlgmr.msra.gmra.mrb[2].mxu0 %vm78_vm0, %v1164_v10 }
 0x928   :  { %v2816_v11 = vpop.eup %2815  ;;  %1253 = vmatprep.mubr.f32.mxu0 %v2875_v25 }
 0x929   :  { %v1165_v12 = vmul.f32 %v2816_v11, %v1149_v34 }
 0x92b   :  { %2229 = vmatmul.mubr.msk.f32.gmra.mrb[4].mxu0 %vm78_vm0, %v1165_v12 }
 0x9fa   :  { %v3264_v14 = vpop.f32.mrb[2].mxu0 }
 0x9fb   :  { %v1251_v15 = vpop.f32.mrb[3].mxu0 }
 0x9fc   :  { %v3266_v16 = vadd.f32 %v1251_v15, %v1174_v13 }
 0x9fe   :  { %v3268_v17 = vpop.f32.mrb[4].mxu0  ;;  %v1262_v25 = vmul.f32 %v2981_v45, %v3266_v16  ;;  %v1868_v18 = vmul.f32 %v3130_v4, %v3266_v16  ;;  %v3282_v23 = vmul.f32 %v3266_v16, %v3087_v50  ;;  %v3286_v26 = vmul.f32 %v3266_v16, %v3091_v56 }
 0x9ff   :  { %v1257_v19 = vpop.f32.mrb[5].mxu0  ;;  %v3298_v28 = vmul.f32 %v3266_v16, %v3153_v22  ;;  %v3307_v31 = vmul.f32 %v3266_v16, %v3097_v62  ;;  %v1381_v37 = vmul.f32 %v3004_v54, %v3266_v16 }
 0xa00   :  { %v3274_v21 = vadd.f32 %v1257_v19, %v1174_v13  ;;  %2450 = vmatprep.mubr.msk.f32.mxu0 %vm78_vm0, %v1262_v25  ;;  %2492 = vmatprep.mubr.msk.f32.mxu1 %vm78_vm0, %v1868_v18 }
 0xa02   :  { %v2752_v40 = vpack.i.bf16 %v3274_v21, %v3266_v16  ;;  %v3290_v27 = vmul.f32 %v3274_v21, %v3087_v50  ;;  %v3294_v48 = vmul.f32 %v3274_v21, %v3091_v56  ;;  %v3302_v30 = vmul.f32 %v3274_v21, %v3153_v22 }
 0xa03   :  { %v3311_v50 = vmul.f32 %v3274_v21, %v3097_v62  ;;  %v1263_v62 = vmul.f32 %v2981_v45, %v3274_v21  ;;  %v1869_v36 = vmul.f32 %v3130_v4, %v3274_v21  ;;  %v1382_v0 = vmul.f32 %v3004_v54, %v3274_v21 }
 0xa04   :  { %2753 = vrot.lane.b32.xlu0 %v2752_v40, %s2876_s19  ;;  %v2757_v56 = vpack.i.bf16 %v3290_v27, %v3282_v23  ;;  %v2762_v47 = vpack.i.bf16 %v3294_v48, %v3286_v26  ;;  %v2772_v22 = vpack.i.bf16 %v3302_v30, %v3298_v28 }
 0xa05   :  { %v2767_v33 = vpack.i.bf16 %v3311_v50, %v3307_v31  ;;  %v2211_v50 = vld [vmem:[%s3506_s4 + $0x80] sm:$0xff] }
 0xa76   :  { %v2754_v52 = vpop.permute.xlu0 %2753 }
 0xa77   :  { %v2756_v34 = vunpack.i.h.bf16 %v2754_v52  ;;  %v2755_v35 = vunpack.i.l.bf16 %v2754_v52 }
 0xa79   :  { %v3321_v1 = vpack.c.bf16 %v2756_v34, %v2755_v35 }
 0xa7b   :  { %2627 = vmatprep.subr.msk.bf16.mxu0 %vm3012_vm8, %v3321_v1  ;;  %2657 = vmatprep.subr.msk.bf16.mxu1 %vm3012_vm8, %v3321_v1 }
 0xa7c   :  { %2630 = vmatpush3.bf16.xpose.msk.msra.mxu0 %vm3012_vm8, %v3321_v1  ;;  %2660 = vmatpush3.bf16.xpose.msk.msra.mxu1 %vm3012_vm8, %v3321_v1 }
 0xa7d   :  { %2633 = vmatprep.subr.msk.bf16.mxu0 %vm3012_vm8, %v3321_v1 }
 0xa83   :  { %2451 = vmatmul.mubr.msk.f32.vlgmr.msra.gmra.mrb[6].mxu0 %vm78_vm0, %v1263_v62  ;;  %2493 = vmatmul.mubr.msk.f32.vlgmr.msra.gmra.mrb[12].mxu1 %vm78_vm0, %v1869_v36 }
 0xa84   :  { %2636 = vmatpush3.bf16.xpose.msk.msra.mxu0 %vm3012_vm8, %v3321_v1  ;;  %2457 = vmatprep.mubr.msk.f32.mxu0 %vm78_vm0, %v1381_v37 }
 0xa8b   :  { %2458 = vmatmul.mubr.msk.f32.vlgmr.msra.gmra.mrb[8].mxu0 %vm78_vm0, %v1382_v0 }
 0xb56   :  { %v2452_v45 = vpop.f32.mrb[6].mxu0  ;;  %v3353_v4 = vpop.f32.mrb[12].mxu1 }
 0xb57   :  { %v1346_v42 = vpop.f32.mrb[7].mxu0  ;;  %v3355_v44 = vpop.f32.mrb[13].mxu1  ;;  %v1356_v61 = vsel %vm29_vm11, %v2452_v45, -1e+09 }
 0xb58   :  { %v1355_v60 = vsel %vm28_vm9, %v1346_v42, -1e+09  ;;  %v1360_v2 = vsel %vm297_vm10, %v1356_v61, -inf  ;;  %v1951_v58 = vsel %vm28_vm9, %v3355_v44, -1e+09 }
 0xb59   :  { %v1357_v43 = vsel %vm297_vm10, %v1355_v60, -inf }
 0xb5e   :  { %v2459_v51 = vpop.f32.mrb[8].mxu0 }
 0xb5f   :  { %v1455_v53 = vpop.f32.mrb[9].mxu0  ;;  %v1465_v41 = vsel %vm29_vm11, %v2459_v51, -1e+09 }
 0xb60   :  { %v1464_v55 = vsel %vm28_vm9, %v1455_v53, -1e+09  ;;  %v1469_v54 = vsel %vm297_vm10, %v1465_v41, -inf }
 0xb61   :  { %v1466_v57 = vsel %vm297_vm10, %v1464_v55, -inf }
 0xb62   :  { %1467 = vmax.xlane.f32.xlu1 %v1466_v57 }
 0xb66   :  { %1470 = vmax.xlane.f32.xlu1 %v1469_v54 }
 0xb6a   :  { %1358 = vmax.xlane.f32.xlu1 %v1357_v43 }
 0xb6e   :  { %1361 = vmax.xlane.f32.xlu1 %v1360_v2  ;;  %v1669_v2 = vmul.f32 %v2984_v46, %v3274_v21  ;;  %v1952_v21 = vsel %vm29_vm11, %v3353_v4, -1e+09 }
 0xbef   :  { %v1468_v32 = vpop.xlane.xlu1 %1467 }
 0xbf0   :  { %v1472_v40 = vsub.f32 %v1464_v55, %v1468_v32 }
 0xbf2   :  { %v1474_v23 = vmul.f32 1.442695, %v1472_v40 }
 0xbf3   :  { %v1471_v3 = vpop.xlane.xlu1 %1470 }
 0xbf4   :  { %v1473_v49 = vsub.f32 %v1465_v41, %v1471_v3 }
 0xbf6   :  { %v1476_v39 = vmul.f32 1.442695, %v1473_v49 }
 0xbf7   :  { %v1359_v5 = vpop.xlane.xlu1 %1358 }
 0xbf8   :  { %2817 = vpow2.f32 %v1476_v39  ;;  %v1363_v8 = vsub.f32 %v1355_v60, %v1359_v5 }
 0xbfa   :  { %v1365_v63 = vmul.f32 1.442695, %v1363_v8 }
 0xbfb   :  { %v1362_v9 = vpop.xlane.xlu1 %1361 }
 0xbfc   :  { %2819 = vpow2.f32 %v1365_v63  ;;  %v1364_v10 = vsub.f32 %v1356_v61, %v1362_v9  ;;  %v1668_v61 = vmul.f32 %v2984_v46, %v3266_v16  ;;  %v1953_v46 = vsel %vm297_vm10, %v1951_v58, -inf }
 0xbfe   :  { %v1367_v11 = vmul.f32 1.442695, %v1364_v10 }
 0xc00   :  { %2821 = vpow2.f32 %v1367_v11 }
 0xc01   :  { %2823 = vpow2.f32 %v1474_v23 }
 0xc02   :  { %v2818_v12 = vpop.eup %2817 }
 0xc03   :  { %v1481_v13 = vsel %vm297_vm10, %v2818_v12, 0.0 }
 0xc04   :  { %1482 = vadd.xlane.f32.xlu0 %v1481_v13 }
 0xc06   :  { %v2820_v15 = vpop.eup %2819 }
 0xc07   :  { %v1369_v25 = vsel %vm297_vm10, %v2820_v15, 0.0 }
 0xc08   :  { %1370 = vadd.xlane.f32.xlu1 %v1369_v25 }
 0xc0a   :  { %v2822_v18 = vpop.eup %2821 }
 0xc0b   :  { %v1372_v19 = vsel %vm297_vm10, %v2822_v18, 0.0  ;;  %v2824_v27 = vpop.eup %2823 }
 0xc0c   :  { %1373 = vadd.xlane.f32.xlu1 %v1372_v19  ;;  %v1478_v52 = vsel %vm297_vm10, %v2824_v27, 0.0 }
 0xc1d   :  { %2758 = vrot.lane.b32.xlu1 %v2757_v56, %s2877_s20 }
 0xc41   :  { %1479 = vadd.xlane.f32.xlu1 %v1478_v52 }
 0xc52   :  { %2763 = vrot.lane.b32.xlu1 %v2762_v47, %s2877_s20 }
 0xc91   :  { %v1483_v56 = vpop.xlane.xlu0 %1482 }
 0xc92   :  { %2825 = vrcp.f32 %v1483_v56 }
 0xc95   :  { %v1371_v34 = vpop.xlane.xlu1 %1370 }
 0xc96   :  { %2827 = vrcp.f32 %v1371_v34 }
 0xc99   :  { %v1374_v35 = vpop.xlane.xlu1 %1373 }
 0xc9c   :  { %v2826_v26 = vpop.eup %2825 }
 0xc9d   :  { %v2759_v62 = vpop.permute.xlu1 %2758  ;;  %v1487_v41 = vmul.f32 %v2826_v26, %v2818_v12 }
 0xc9e   :  { %v2761_v36 = vunpack.i.h.bf16 %v2759_v62  ;;  %v2760_v37 = vunpack.i.l.bf16 %v2759_v62 }
 0xca0   :  { %v2637_v0 = vpack.c.bf16 %v2761_v36, %v2760_v37  ;;  %v2828_v48 = vpop.eup %2827 }
 0xca1   :  { %v1377_v54 = vmul.f32 %v2828_v48, %v2820_v15 }
 0xca2   :  { %2638 = vmatprep.subr.bf16.mxu0 %v2637_v0 }
 0xca3   :  { %2640 = vmatpush3.bf16.msra.mxu0 %v2637_v0 }
 0xcce   :  { %v1480_v45 = vpop.xlane.xlu1 %1479 }
 0xccf   :  { %2829 = vrcp.f32 %v1480_v45 }
 0xcd0   :  { %2831 = vrcp.f32 %v1374_v35 }
 0xcd2   :  { %v2764_v42 = vpop.permute.xlu1 %2763 }
 0xcd3   :  { %v2766_v51 = vunpack.i.h.bf16 %v2764_v42  ;;  %v2765_v53 = vunpack.i.l.bf16 %v2764_v42 }
 0xcd5   :  { %v2641_v55 = vpack.c.bf16 %v2766_v51, %v2765_v53 }
 0xcd7   :  { %2642 = vmatprep.subr.bf16.mxu0 %v2641_v55 }
 0xcd9   :  { %v2830_v47 = vpop.eup %2829 }
 0xcda   :  { %v1486_v57 = vmul.f32 %v2830_v47, %v2824_v27  ;;  %v2832_v60 = vpop.eup %2831 }
 0xcdb   :  { %v1378_v43 = vmul.f32 %v2832_v60, %v2822_v18 }
 0xcdc   :  { %2464 = vmatprep.mubr.msk.f32.mxu0 %vm297_vm10, %v1486_v57  ;;  %v1170_v57 = vrot.slane %v3259_v59, %v109_v29 }
 0xcdd   :  { %2465 = vmatmul.mubr.msk.f32.vlgmr.msra.gmra.mrb[10].mxu0 %vm297_vm10, %v1487_v41 }
 0xcde   :  { %2644 = vmatpush3.bf16.msra.mxu0 %v2641_v55  ;;  %2471 = vmatprep.mubr.msk.f32.mxu0 %vm297_vm10, %v1377_v54  ;;  %v1250_v60 = vadd.f32 %v3264_v14, %v1170_v57 }
 0xcdf   :  { %2647 = vmatprep.subr.msk.bf16.mxu0 %vm3012_vm8, %v3321_v1 }
 0xce5   :  { %2472 = vmatmul.mubr.msk.f32.vlgmr.msra.gmra.mrb[10].mxu0 %vm297_vm10, %v1378_v43  ;;  %v2213_v43 = vld [vmem:[%s3506_s4 + $0x90] sm:$0xff] }
 0xce6   :  { %2478 = vmatprep.mubr.msk.f32.mxu0 %vm78_vm0, %v1668_v61  ;;  %v2669_v59 = vpack.c.bf16 %v2214_v38, %v2213_v43  ;;  %v1260_v61 = vmax.f32 %v1250_v60, 0.0 }
 0xce7   :  { %2650 = vmatpush3.bf16.xpose.msk.msra.mxu0 %vm3012_vm8, %v3321_v1  ;;  %v1956_v1 = vsel %vm297_vm10, %v1952_v21, -inf }
 0xcee   :  { %2479 = vmatmul.mubr.msk.f32.vlgmr.msra.gmra.mrb[12].mxu0 %vm78_vm0, %v1669_v2  ;;  %v2215_v2 = vld [vmem:[%s3506_s4 + $0xa0] sm:$0xff] }
 0xdc1   :  { %v2480_v32 = vpop.f32.mrb[12].mxu0 }
 0xdc2   :  { %v1752_v3 = vsel %vm29_vm11, %v2480_v32, -1e+09  ;;  %v1742_v49 = vpop.f32.mrb[13].mxu0  ;;  %v2216_v32 = vld [vmem:[%s3506_s4 + $0xa8] sm:$0xff] }
 0xdc3   :  { %v1751_v16 = vsel %vm28_vm9, %v1742_v49, -1e+09  ;;  %v1756_v39 = vsel %vm297_vm10, %v1752_v3, -inf  ;;  %v2673_v14 = vpack.c.bf16 %v2216_v32, %v2215_v2  ;;  %v2218_v49 = vld [vmem:[%s3506_s4 + $0xb8] sm:$0xff] }
 0xdc4   :  { %1757 = vmax.xlane.f32.xlu1 %v1756_v39  ;;  %v1753_v5 = vsel %vm297_vm10, %v1751_v16, -inf  ;;  %v2219_v39 = vld [vmem:[%s3506_s4 + $0xc0] sm:$0xff] }
 0xdc5   :  { %1754 = vmax.xlane.f32.xlu0 %v1753_v5  ;;  %v2220_v5 = vld [vmem:[%s3506_s4 + $0xc8] sm:$0xff] }
 0xdc9   :  { %1954 = vmax.xlane.f32.xlu0 %v1953_v46  ;;  %v2221_v46 = vld [vmem:[%s3506_s4 + $0xd0] sm:$0xff] }
 0xdcd   :  { %1957 = vmax.xlane.f32.xlu0 %v1956_v1 }
 0xdd5   :  { %2773 = vrot.lane.b32.xlu1 %v2772_v22, %s2877_s20 }
 0xe51   :  { %v1758_v63 = vpop.xlane.xlu1 %1757 }
 0xe52   :  { %v1755_v8 = vpop.xlane.xlu0 %1754  ;;  %v1760_v9 = vsub.f32 %v1752_v3, %v1758_v63  ;;  %v2217_v3 = vld [vmem:[%s3506_s4 + $0xb0] sm:$0xff]  ;;  %v2224_v63 = vld [vmem:[%s3506_s4 + $0xe8] sm:$0xff] }
 0xe53   :  { %v1759_v4 = vsub.f32 %v1751_v16, %v1755_v8  ;;  %v2677_v16 = vpack.c.bf16 %v2218_v49, %v2217_v3  ;;  %v2223_v8 = vld [vmem:[%s3506_s4 + $0xe0] sm:$0xff] }
 0xe54   :  { %v1763_v7 = vmul.f32 1.442695, %v1760_v9  ;;  %v2226_v9 = vld [vmem:[%s3506_s4 + $0xf8] sm:$0xff] }
 0xe55   :  { %v1761_v15 = vmul.f32 1.442695, %v1759_v4  ;;  %v2774_v62 = vpop.permute.xlu1 %2773 }
 0xe56   :  { %v1955_v6 = vpop.xlane.xlu0 %1954  ;;  %v2776_v37 = vunpack.i.h.bf16 %v2774_v62  ;;  %v2775_v0 = vunpack.i.l.bf16 %v2774_v62 }
 0xe57   :  { %v1959_v44 = vsub.f32 %v1951_v58, %v1955_v6  ;;  %v2681_v58 = vpack.c.bf16 %v2220_v5, %v2219_v39  ;;  %v2689_v6 = vpack.c.bf16 %v2224_v63, %v2223_v8 }
 0xe58   :  { %v2661_v53 = vpack.c.bf16 %v2776_v37, %v2775_v0 }
 0xe59   :  { %v1961_v10 = vmul.f32 1.442695, %v1959_v44  ;;  %v2225_v44 = vld [vmem:[%s3506_s4 + $0xf0] sm:$0xff] }
 0xe5a   :  { %v1958_v11 = vpop.xlane.xlu0 %1957 }
 0xe5b   :  { %2833 = vpow2.f32 %v1961_v10  ;;  %v1960_v12 = vsub.f32 %v1952_v21, %v1958_v11  ;;  %v2222_v21 = vld [vmem:[%s3506_s4 + $0xd8] sm:$0xff]  ;;  %v2693_v10 = vpack.c.bf16 %v2226_v9, %v2225_v44  ;;  %v1256_v11 = vadd.f32 %v3268_v17, %v1170_v57  ;;  %v2254_v17 = vld [vmem:[%s3507_s5 + $0x1] ss:$0 sm:$0xff] }
 0xe5c   :  { %v2685_v1 = vpack.c.bf16 %v2222_v21, %v2221_v46 }
 0xe5d   :  { %v1963_v13 = vmul.f32 1.442695, %v1960_v12  ;;  %v1261_v12 = vmax.f32 %v1256_v11, 0.0 }
 0xe5f   :  { %2835 = vpow2.f32 %v1963_v13  ;;  %v2850_v13 = vld [vmem:[%s3502_s0] sm:$0xff] }
 0xe60   :  { %2837 = vpow2.f32 %v1763_v7  ;;  %v2849_v7 = vld [vmem:[%s3502_s0 + $0x8] sm:$0xff]  ;;  %s2851_s0 = scalar_lea.vmem %s2161_s13, 256 }
 0xe61   :  { %2839 = vpow2.f32 %v1761_v15  ;;  %v1107_v4 = vadd.f32 nan, %v2849_v7  ;;  %v1106_v15 = vadd.f32 nan, %v2850_v13  ;;  %p2852_p0 = scmp.ne.s32.totalorder %s2161_s13, %s2851_s0  ;;  %p2857_p2 = scmp.lt.s32.totalorder %s2851_s0, %s2851_s0 }
 0xe63   :  { %p2858_p3 = por %p2857_p2, %p2856_p1 }
 0xe65   :  { %v2834_v25 = vpop.eup %2833  ;;  %p2859_p4 = pnand %p2858_p3, %p2852_p0 }
 0xe66   :  { %v1965_v28 = vsel %vm297_vm10, %v2834_v25, 0.0 }
 0xe67   :  { %1966 = vadd.xlane.f32.xlu0 %v1965_v28 }
 0xe69   :  { %v2836_v30 = vpop.eup %2835 }
 0xe6a   :  { %v1968_v22 = vsel %vm297_vm10, %v2836_v30, 0.0  ;;  %v2838_v18 = vpop.eup %2837 }
 0xe6b   :  { %1969 = vadd.xlane.f32.xlu0 %v1968_v22  ;;  %v1768_v19 = vsel %vm297_vm10, %v2838_v18, 0.0  ;;  %v2840_v40 = vpop.eup %2839 }
 0xe6c   :  { %v1765_v23 = vsel %vm297_vm10, %v2840_v40, 0.0 }
 0xe6f   :  { %1769 = vadd.xlane.f32.xlu0 %v1768_v19 }
 0xe73   :  { %1766 = vadd.xlane.f32.xlu0 %v1765_v23 }
 0xe89   :  { %2768 = vrot.lane.b32.xlu0 %v2767_v33, %s2877_s20  ;;  %v2212_v33 = vld [vmem:[%s3506_s4 + $0x88] sm:$0xff] }
 0xe8a   :  { %v2665_v47 = vpack.c.bf16 %v2212_v33, %v2211_v50 }
 0xef4   :  { %v1967_v27 = vpop.xlane.xlu0 %1966 }
 0xef5   :  { %2841 = vrcp.f32 %v1967_v27 }
 0xef8   :  { %v1970_v52 = vpop.xlane.xlu0 %1969 }
 0xefc   :  { %v1770_v34 = vpop.xlane.xlu0 %1769 }
 0xefd   :  { %2843 = vrcp.f32 %v1770_v34 }
 0xeff   :  { %v2842_v51 = vpop.eup %2841 }
 0xf00   :  { %v1767_v35 = vpop.xlane.xlu0 %1766  ;;  %v1973_v41 = vmul.f32 %v2842_v51, %v2834_v25  ;;  %v1109_v25 = vadd.f32 %v1107_v4, %v3219_v20 }
 0xf01   :  { %2845 = vrcp.f32 %v1767_v35 }
 0xf02   :  { %2847 = vrcp.f32 %v1970_v52 }
 0xf04   :  { %v2769_v36 = vpop.permute.xlu0 %2768 }
 0xf05   :  { %v2771_v56 = vunpack.i.h.bf16 %v2769_v36  ;;  %v2770_v45 = vunpack.i.l.bf16 %v2769_v36 }
 0xf07   :  { %v2651_v42 = vpack.c.bf16 %v2771_v56, %v2770_v45  ;;  %v2844_v31 = vpop.eup %2843 }
 0xf08   :  { %v1774_v48 = vmul.f32 %v2844_v31, %v2838_v18 }
 0xf09   :  { %2652 = vmatprep.subr.bf16.mxu0 %v2651_v42 }
 0xf0a   :  { %2654 = vmatpush3.bf16.msra.mxu0 %v2651_v42 }
 0xf0b   :  { %v2846_v55 = vpop.eup %2845  ;;  %2662 = vmatprep.subr.bf16.mxu0 %v2661_v53 }
 0xf0c   :  { %v1773_v26 = vmul.f32 %v2846_v55, %v2840_v40  ;;  %v2848_v54 = vpop.eup %2847 }
 0xf0d   :  { %v1974_v29 = vmul.f32 %v2848_v54, %v2836_v30  ;;  %v1108_v30 = vadd.f32 %v1106_v15, %v3222_v24 }
 0xf0e   :  { %2485 = vmatprep.mubr.msk.f32.mxu0 %vm297_vm10, %v1773_v26 }
 0xf0f   :  { %2486 = vmatmul.mubr.msk.f32.vlgmr.msra.gmra.mrb[10].mxu0 %vm297_vm10, %v1774_v48 }
 0xf10   :  { %2664 = vmatpush3.bf16.msra.mxu0 %v2661_v53  ;;  %2499 = vmatprep.mubr.msk.f32.mxu0 %vm297_vm10, %v1973_v41 }
 0xf11   :  { %2666 = vmatprep.subr.bf16.mxu0 %v2665_v47 }
 0xf17   :  { %2500 = vmatmul.mubr.msk.f32.vlgmr.msra.gmra.mrb[10].mxu0 %vm297_vm10, %v1974_v29 }
 0xf18   :  { %2668 = vmatpush3.bf16.msra.mxu0 %v2665_v47  ;;  %2534 = vmatprep.mubr.f32.mxu0 %v1260_v61 }
 0xf19   :  { %2670 = vmatprep.subr.bf16.mxu0 %v2669_v59 }
 0xf1c   :  { %2672 = vmatpush3.bf16.msra.mxu0 %v2669_v59 }
 0xf1d   :  { %2674 = vmatprep.subr.bf16.mxu0 %v2673_v14 }
 0xf20   :  { %2676 = vmatpush3.bf16.msra.mxu0 %v2673_v14 }
 0xf21   :  { %2678 = vmatprep.subr.bf16.mxu0 %v2677_v16 }
 0xf24   :  { %2680 = vmatpush3.bf16.msra.mxu0 %v2677_v16 }
 0xf25   :  { %2682 = vmatprep.subr.bf16.mxu0 %v2681_v58 }
 0xf28   :  { %2684 = vmatpush3.bf16.msra.mxu0 %v2681_v58 }
 0xf29   :  { %2686 = vmatprep.subr.bf16.mxu0 %v2685_v1 }
 0xf2c   :  { %2688 = vmatpush3.bf16.msra.mxu0 %v2685_v1 }
 0xf2d   :  { %2690 = vmatprep.subr.bf16.mxu0 %v2689_v6 }
 0xf30   :  { %2692 = vmatpush3.bf16.msra.mxu0 %v2689_v6 }
 0xf31   :  { %2694 = vmatprep.subr.bf16.mxu0 %v2693_v10 }
 0xf34   :  { %2696 = vmatpush3.bf16.msra.mxu0 %v2693_v10 }
 0xf37   :  { %2535 = vmatmul.mubr.f32.vlgmr.msra.gmra.mrb[10].mxu0 %v1261_v12 }
0x100a   :  { %v2536_v28 = vpop.f32.mrb[10].mxu0 }
0x100b   :  { %v2701_v22 = vadd.f32 %v2536_v28, %v1109_v25  ;;  %v2140_v18 = vpop.f32.mrb[11].mxu0 }
0x100c   :  { %v2703_v19 = vadd.f32 %v2140_v18, %v1108_v30 }
0x100d   :  { %v2702_v40 = vadd.f32 %v2701_v22, %v2254_v17 }
0x100e   :  { %v2704_v23 = vadd.f32 %v2703_v19, %v2254_v17 }
0x100f   :  { %2154 = vst.msk [vmem:[#allocation2 + $0x8] sm:$0xff] %vm78_vm0, %v2702_v40 }
0x1010   :  { %2153 = vst.msk [vmem:[#allocation2] sm:$0xff] %vm78_vm0, %v2704_v23 }
0x1011   :  { %2862 = shalt.err (!%p2859_p4)
}
0x1012   :  { %s2863_s15 = scalar_lea.hbm %s3508_s6, 256 }
0x1013   :  { %p2864_p5 = scmp.ne.s32.totalorder %s3508_s6, %s2863_s15  ;;  %p2867_p6 = scmp.lt.u32.totalorder %s2863_s15, %s3508_s6 }
0x1015   :  { %p2869_p7 = pnand %p2867_p6, %p2864_p5 }
0x1017   :  { %2872 = shalt.err (!%p2869_p7)
}
0x1018   :  { %s2879_s22 = smov 128   ;;  %s2880_s23 = smov 8  }
0x1019   :  { %2166 = dma.vmem_to_hbm [thread:$0]  %s2161_s13, 256, %s3508_s6, [#allocation3], %s2879_s22, %s2879_s22, %s2880_s23  }
0x101a   :  { %2873 = dma.done.wait [#allocation3], 256  }
0x101b   :  { %2874 = vsyncadd [#allocation3], 4294967040 }
0x101c   :  { %2170 = vsyncpa [#allocation3], 1 }

</bundles_post_ra>
